<compile_context>
chip_gen: v7x
topology: tpu7x:2x2x1
jax: 0.10.0
libtpu: 0.0.40
codegen_flags: <defaults>
</compile_context>

<pallas_src>
import math

import jax
import jax.numpy as jnp
from jax.experimental import pallas as pl
from jax.experimental.pallas import tpu as pltpu

# ---- tiny "BERT" config (small shapes, consistent with the module's forward) ----
VOCAB = 100
HID = 32          # bert hidden_size == LSTM input_size == LSTM hidden_size
HEADS = 2
HEAD_DIM = HID // HEADS
INTER = 64        # FFN intermediate size
LAYERS = 2
MAX_POS = 16
BATCH = 2
SEQ = 8
LN_EPS = 1e-12


# ----------------------------- fused Pallas kernel -----------------------------

def _fused_bert_lstm_kernel(
        emb_ref,                               # (1, S, H)   summed embeddings (pre-LN)
        eg_ref, eb_ref,                        # (1, H)      embedding LayerNorm
        wqkv_ref, bqkv_ref,                    # (L, H, 3H), (L, 1, 3H)
        wo_ref, bo_ref,                        # (L, H, H),  (L, 1, H)
        ln1g_ref, ln1b_ref,                    # (L, 1, H)
        w1_ref, b1_ref,                        # (L, H, I),  (L, 1, I)
        w2_ref, b2_ref,                        # (L, I, H),  (L, 1, H)
        ln2g_ref, ln2b_ref,                    # (L, 1, H)
        wih_ref, whh_ref, bl_ref,              # (H, 4H), (H, 4H), (1, 4H)
        out_ref):                              # (1, S, H)
    S, H = SEQ, HID

    def layernorm(x, g, b):
        mu = jnp.mean(x, axis=-1, keepdims=True)
        var = jnp.mean(jnp.square(x - mu), axis=-1, keepdims=True)
        return (x - mu) * jax.lax.rsqrt(var + LN_EPS) * g + b

    def gelu(x):
        # tanh-approx GELU (TPU-friendly).
        # TODO(synk): HF BERT default act is exact erf-GELU; tanh form used for lowering safety.
        return 0.5 * x * (1.0 + jnp.tanh(0.7978845608028654 * (x + 0.044715 * x * x * x)))

    # ---- embeddings LayerNorm ----
    h = emb_ref[0].astype(jnp.float32)                       # (S, H)
    h = layernorm(h, eg_ref[...], eb_ref[...])

    # ---- transformer encoder layers (static Python loop; everything stays in VMEM) ----
    scale = 1.0 / math.sqrt(HEAD_DIM)
    for l in range(LAYERS):
        # fused QKV projection: (S, H) @ (H, 3H) -> (S, 3H)
        qkv = jnp.dot(h, wqkv_ref[l], preferred_element_type=jnp.float32) + bqkv_ref[l]

        # per-head attention (static loop over HEADS; pure lane slices, no transposes to HBM)
        head_outs = []
        for hd in range(HEADS):
            lo = hd * HEAD_DIM
            q = qkv[:, lo:lo + HEAD_DIM]                     # (S, dh)
            k = qkv[:, H + lo:H + lo + HEAD_DIM]
            v = qkv[:, 2 * H + lo:2 * H + lo + HEAD_DIM]
            s = jnp.dot(q, k.T, preferred_element_type=jnp.float32) * scale   # (S, S)
            s = s - jnp.max(s, axis=-1, keepdims=True)
            p = jnp.exp(s)
            p = p * pl.reciprocal(jnp.sum(p, axis=-1, keepdims=True), approx=True)
            head_outs.append(jnp.dot(p, v, preferred_element_type=jnp.float32))
        attn = jnp.concatenate(head_outs, axis=-1)           # (S, H)

        # attention output projection + residual + LayerNorm (all fused)
        ao = jnp.dot(attn, wo_ref[l], preferred_element_type=jnp.float32) + bo_ref[l]
        h = layernorm(h + ao, ln1g_ref[l], ln1b_ref[l])

        # FFN: matmul + bias + GELU + matmul + bias + residual + LayerNorm (fused)
        ff = jnp.dot(h, w1_ref[l], preferred_element_type=jnp.float32) + b1_ref[l]
        ff = gelu(ff)
        ff = jnp.dot(ff, w2_ref[l], preferred_element_type=jnp.float32) + b2_ref[l]
        h = layernorm(h + ff, ln2g_ref[l], ln2b_ref[l])

    # ---- LSTM over time (unrolled, one sequence per grid step) ----
    w_ih = wih_ref[...]                                      # (H, 4H)
    w_hh = whh_ref[...]                                      # (H, 4H)
    bl = bl_ref[...]                                         # (1, 4H)

    # Hoist the input projection for all time steps into one lane-dense matmul:
    # (S, H) @ (H, 4H=128) -> (S, 4H); the recurrence only needs the h-path per step.
    gx = jnp.dot(h, w_ih, preferred_element_type=jnp.float32) + bl      # (S, 4H)

    h_t = jnp.zeros((1, H), jnp.float32)
    c_t = jnp.zeros((1, H), jnp.float32)
    hs = []
    for t in range(S):                                       # static unroll, T = 8
        gates = gx[t:t + 1, :] + jnp.dot(h_t, w_hh, preferred_element_type=jnp.float32)
        i = jax.nn.sigmoid(gates[:, 0:H])
        f = jax.nn.sigmoid(gates[:, H:2 * H])
        g = jnp.tanh(gates[:, 2 * H:3 * H])
        o = jax.nn.sigmoid(gates[:, 3 * H:4 * H])
        c_t = f * c_t + i * g
        h_t = o * jnp.tanh(c_t)
        hs.append(h_t)
    out_ref[0] = jnp.concatenate(hs, axis=0).astype(out_ref.dtype)      # (S, H)


# ----------------------------- parameters -----------------------------

def init_params(key):
    keys = iter(jax.random.split(key, 64))

    def nrm(shape):
        return (0.02 * jax.random.normal(next(keys), shape)).astype(jnp.float32)

    return {
        "word_emb": nrm((VOCAB, HID)),
        "pos_emb": nrm((MAX_POS, HID)),
        "type_emb": nrm((2, HID)),
        "emb_ln_g": jnp.ones((1, HID), jnp.float32),
        "emb_ln_b": jnp.zeros((1, HID), jnp.float32),
        # stacked per-layer encoder weights (layer axis leading) so the whole
        # encoder fits in a handful of VMEM-resident refs.
        "wqkv": nrm((LAYERS, HID, 3 * HID)),                 # [wq | wk | wv] fused
        "bqkv": jnp.zeros((LAYERS, 1, 3 * HID), jnp.float32),
        "wo": nrm((LAYERS, HID, HID)),
        "bo": jnp.zeros((LAYERS, 1, HID), jnp.float32),
        "ln1_g": jnp.ones((LAYERS, 1, HID), jnp.float32),
        "ln1_b": jnp.zeros((LAYERS, 1, HID), jnp.float32),
        "w1": nrm((LAYERS, HID, INTER)),
        "b1": jnp.zeros((LAYERS, 1, INTER), jnp.float32),
        "w2": nrm((LAYERS, INTER, HID)),
        "b2": jnp.zeros((LAYERS, 1, HID), jnp.float32),
        "ln2_g": jnp.ones((LAYERS, 1, HID), jnp.float32),
        "ln2_b": jnp.zeros((LAYERS, 1, HID), jnp.float32),
        # LSTM weights stored transposed vs torch (H, 4H); gate order i,f,g,o;
        # bias = b_ih + b_hh combined.
        "lstm_w_ih": nrm((HID, 4 * HID)),
        "lstm_w_hh": nrm((HID, 4 * HID)),
        "lstm_b": jnp.zeros((1, 4 * HID), jnp.float32),
    }


# ----------------------------- forward -----------------------------

def bert_lstm_forward(token_ids, params):
    B, S = token_ids.shape

    # Embedding gather is data-dependent row indexing -> plain-JAX glue (tiny).
    emb = (params["word_emb"][token_ids]
           + params["pos_emb"][:S][None, :, :]
           + params["type_emb"][0][None, None, :])           # (B, S, H) f32

    layer_w_spec = lambda shape: pl.BlockSpec(shape, lambda b: tuple(0 for _ in shape))

    out = pl.pallas_call(
        _fused_bert_lstm_kernel,
        out_shape=jax.ShapeDtypeStruct((B, S, HID), jnp.float32),
        grid=(B,),
        in_specs=[
            pl.BlockSpec((1, S, HID), lambda b: (b, 0, 0)),          # emb
            layer_w_spec((1, HID)),                                  # emb_ln_g
            layer_w_spec((1, HID)),                                  # emb_ln_b
            layer_w_spec((LAYERS, HID, 3 * HID)),                    # wqkv
            layer_w_spec((LAYERS, 1, 3 * HID)),                      # bqkv
            layer_w_spec((LAYERS, HID, HID)),                        # wo
            layer_w_spec((LAYERS, 1, HID)),                          # bo
            layer_w_spec((LAYERS, 1, HID)),                          # ln1_g
            layer_w_spec((LAYERS, 1, HID)),                          # ln1_b
            layer_w_spec((LAYERS, HID, INTER)),                      # w1
            layer_w_spec((LAYERS, 1, INTER)),                        # b1
            layer_w_spec((LAYERS, INTER, HID)),                      # w2
            layer_w_spec((LAYERS, 1, HID)),                          # b2
            layer_w_spec((LAYERS, 1, HID)),                          # ln2_g
            layer_w_spec((LAYERS, 1, HID)),                          # ln2_b
            layer_w_spec((HID, 4 * HID)),                            # lstm_w_ih
            layer_w_spec((HID, 4 * HID)),                            # lstm_w_hh
            layer_w_spec((1, 4 * HID)),                              # lstm_b
        ],
        out_specs=pl.BlockSpec((1, S, HID), lambda b: (b, 0, 0)),
        compiler_params=pltpu.CompilerParams(
            dimension_semantics=("parallel",)),                      # v7x: 2 TCs over batch
    )(emb,
      params["emb_ln_g"], params["emb_ln_b"],
      params["wqkv"], params["bqkv"],
      params["wo"], params["bo"],
      params["ln1_g"], params["ln1_b"],
      params["w1"], params["b1"],
      params["w2"], params["b2"],
      params["ln2_g"], params["ln2_b"],
      params["lstm_w_ih"], params["lstm_w_hh"], params["lstm_b"])

    return out  # (B, S, HID), matching `x, _ = self.rnn(self.bert(x)[0]); return x`


if __name__ == "__main__":
    key = jax.random.PRNGKey(0)
    pkey, xkey = jax.random.split(key)
    params = init_params(pkey)
    token_ids = jax.random.randint(xkey, (BATCH, SEQ), 0, VOCAB, dtype=jnp.int32)

    out = jax.jit(bert_lstm_forward)(token_ids, params)
    out = jax.block_until_ready(out)

    assert out.shape == (BATCH, SEQ, HID), out.shape
    assert out.dtype == jnp.float32
    assert bool(jnp.all(jnp.isfinite(out)))
    print("KERNEL_OK")
</pallas_src>

<mosaic_0001>
module attributes {stable_mosaic.version = 11 : i64} {
  func.func @_fused_bert_lstm_kernel(%arg0: i32, %arg1: memref<1x8x32xf32, #tpu.memory_space<vmem>>, %arg2: memref<1x32xf32, #tpu.memory_space<vmem>>, %arg3: memref<1x32xf32, #tpu.memory_space<vmem>>, %arg4: memref<2x32x96xf32, #tpu.memory_space<vmem>>, %arg5: memref<2x1x96xf32, #tpu.memory_space<vmem>>, %arg6: memref<2x32x32xf32, #tpu.memory_space<vmem>>, %arg7: memref<2x1x32xf32, #tpu.memory_space<vmem>>, %arg8: memref<2x1x32xf32, #tpu.memory_space<vmem>>, %arg9: memref<2x1x32xf32, #tpu.memory_space<vmem>>, %arg10: memref<2x32x64xf32, #tpu.memory_space<vmem>>, %arg11: memref<2x1x64xf32, #tpu.memory_space<vmem>>, %arg12: memref<2x64x32xf32, #tpu.memory_space<vmem>>, %arg13: memref<2x1x32xf32, #tpu.memory_space<vmem>>, %arg14: memref<2x1x32xf32, #tpu.memory_space<vmem>>, %arg15: memref<2x1x32xf32, #tpu.memory_space<vmem>>, %arg16: memref<32x128xf32, #tpu.memory_space<vmem>>, %arg17: memref<32x128xf32, #tpu.memory_space<vmem>>, %arg18: memref<1x128xf32, #tpu.memory_space<vmem>>, %arg19: memref<1x8x32xf32, #tpu.memory_space<vmem>>) attributes {dimension_semantics = [#tpu.dimension_semantics<parallel>], iteration_bounds = array<i64: 2>, scalar_prefetch = 0 : i64, scratch_operands = 0 : i64, tpu.core_type = #tpu.core_type<tc>, window_params = [{transform_indices = @transform_0, window_bounds = array<i64: 1, 8, 32>}, {pipeline_mode = #tpu.pipeline_mode<synchronous>, transform_indices = @transform_1, window_bounds = array<i64: 1, 32>}, {pipeline_mode = #tpu.pipeline_mode<synchronous>, transform_indices = @transform_2, window_bounds = array<i64: 1, 32>}, {pipeline_mode = #tpu.pipeline_mode<synchronous>, transform_indices = @transform_3, window_bounds = array<i64: 2, 32, 96>}, {pipeline_mode = #tpu.pipeline_mode<synchronous>, transform_indices = @transform_4, window_bounds = array<i64: 2, 1, 96>}, {pipeline_mode = #tpu.pipeline_mode<synchronous>, transform_indices = @transform_5, window_bounds = array<i64: 2, 32, 32>}, {pipeline_mode = #tpu.pipeline_mode<synchronous>, transform_indices = @transform_6, window_bounds = array<i64: 2, 1, 32>}, {pipeline_mode = #tpu.pipeline_mode<synchronous>, transform_indices = @transform_7, window_bounds = array<i64: 2, 1, 32>}, {pipeline_mode = #tpu.pipeline_mode<synchronous>, transform_indices = @transform_8, window_bounds = array<i64: 2, 1, 32>}, {pipeline_mode = #tpu.pipeline_mode<synchronous>, transform_indices = @transform_9, window_bounds = array<i64: 2, 32, 64>}, {pipeline_mode = #tpu.pipeline_mode<synchronous>, transform_indices = @transform_10, window_bounds = array<i64: 2, 1, 64>}, {pipeline_mode = #tpu.pipeline_mode<synchronous>, transform_indices = @transform_11, window_bounds = array<i64: 2, 64, 32>}, {pipeline_mode = #tpu.pipeline_mode<synchronous>, transform_indices = @transform_12, window_bounds = array<i64: 2, 1, 32>}, {pipeline_mode = #tpu.pipeline_mode<synchronous>, transform_indices = @transform_13, window_bounds = array<i64: 2, 1, 32>}, {pipeline_mode = #tpu.pipeline_mode<synchronous>, transform_indices = @transform_14, window_bounds = array<i64: 2, 1, 32>}, {pipeline_mode = #tpu.pipeline_mode<synchronous>, transform_indices = @transform_15, window_bounds = array<i64: 32, 128>}, {pipeline_mode = #tpu.pipeline_mode<synchronous>, transform_indices = @transform_16, window_bounds = array<i64: 32, 128>}, {pipeline_mode = #tpu.pipeline_mode<synchronous>, transform_indices = @transform_17, window_bounds = array<i64: 1, 128>}, {transform_indices = @transform_18, window_bounds = array<i64: 1, 8, 32>}]} {
    %c0 = arith.constant 0 : index
    %c0_0 = arith.constant 0 : index
    %c0_1 = arith.constant 0 : index
    %0 = vector.load %arg1[%c0, %c0_0, %c0_1] : memref<1x8x32xf32, #tpu.memory_space<vmem>>, vector<1x8x32xf32>
    %1 = vector.shape_cast %0 : vector<1x8x32xf32> to vector<8x32xf32>
    %c0_2 = arith.constant 0 : index
    %c0_3 = arith.constant 0 : index
    %2 = vector.load %arg2[%c0_2, %c0_3] : memref<1x32xf32, #tpu.memory_space<vmem>>, vector<1x32xf32>
    %c0_4 = arith.constant 0 : index
    %c0_5 = arith.constant 0 : index
    %3 = vector.load %arg3[%c0_4, %c0_5] : memref<1x32xf32, #tpu.memory_space<vmem>>, vector<1x32xf32>
    %cst = arith.constant dense<0.000000e+00> : vector<8xf32>
    %4 = vector.multi_reduction <add>, %1, %cst [1] : vector<8x32xf32> to vector<8xf32>
    %5 = vector.shape_cast %4 : vector<8xf32> to vector<8x1xf32>
    %cst_6 = arith.constant 3.200000e+01 : f32
    %6 = vector.broadcast %cst_6 : f32 to vector<8x1xf32>
    %7 = arith.divf %5, %6 : vector<8x1xf32>
    %8 = vector.broadcast %7 : vector<8x1xf32> to vector<8x32xf32>
    %9 = arith.subf %1, %8 : vector<8x32xf32>
    %10 = arith.mulf %9, %9 : vector<8x32xf32>
    %cst_7 = arith.constant dense<0.000000e+00> : vector<8xf32>
    %11 = vector.multi_reduction <add>, %10, %cst_7 [1] : vector<8x32xf32> to vector<8xf32>
    %12 = vector.shape_cast %11 : vector<8xf32> to vector<8x1xf32>
    %cst_8 = arith.constant 3.200000e+01 : f32
    %13 = vector.broadcast %cst_8 : f32 to vector<8x1xf32>
    %14 = arith.divf %12, %13 : vector<8x1xf32>
    %15 = vector.broadcast %7 : vector<8x1xf32> to vector<8x32xf32>
    %16 = arith.subf %1, %15 : vector<8x32xf32>
    %cst_9 = arith.constant 9.99999996E-13 : f32
    %17 = vector.broadcast %cst_9 : f32 to vector<8x1xf32>
    %18 = arith.addf %14, %17 : vector<8x1xf32>
    %19 = math.rsqrt %18 : vector<8x1xf32>
    %20 = vector.broadcast %19 : vector<8x1xf32> to vector<8x32xf32>
    %21 = arith.mulf %16, %20 : vector<8x32xf32>
    %22 = vector.broadcast %2 : vector<1x32xf32> to vector<8x32xf32>
    %23 = arith.mulf %21, %22 : vector<8x32xf32>
    %24 = vector.broadcast %3 : vector<1x32xf32> to vector<8x32xf32>
    %25 = arith.addf %23, %24 : vector<8x32xf32>
    %c0_10 = arith.constant 0 : index
    %c0_11 = arith.constant 0 : index
    %c0_12 = arith.constant 0 : index
    %26 = vector.load %arg4[%c0_10, %c0_11, %c0_12] : memref<2x32x96xf32, #tpu.memory_space<vmem>>, vector<1x32x96xf32>
    %27 = vector.shape_cast %26 : vector<1x32x96xf32> to vector<32x96xf32>
    %cst_13 = arith.constant dense<0.000000e+00> : vector<8x96xf32>
    %28 = tpu.matmul %25, %27, %cst_13 {dimension_numbers = #tpu.dot_dimension_numbers<[1], [0], [0], [1], [0, 0, 1, 1], [], []>} : vector<8x32xf32>, vector<32x96xf32>, vector<8x96xf32> -> vector<8x96xf32>
    %c0_14 = arith.constant 0 : index
    %c0_15 = arith.constant 0 : index
    %c0_16 = arith.constant 0 : index
    %29 = vector.load %arg5[%c0_14, %c0_15, %c0_16] : memref<2x1x96xf32, #tpu.memory_space<vmem>>, vector<1x1x96xf32>
    %30 = vector.shape_cast %29 : vector<1x1x96xf32> to vector<1x96xf32>
    %31 = vector.broadcast %30 : vector<1x96xf32> to vector<8x96xf32>
    %32 = arith.addf %28, %31 : vector<8x96xf32>
    %33 = vector.extract_strided_slice %32 {offsets = [0, 0], sizes = [8, 16], strides = [1, 1]} : vector<8x96xf32> to vector<8x16xf32>
    %34 = vector.extract_strided_slice %32 {offsets = [0, 32], sizes = [8, 16], strides = [1, 1]} : vector<8x96xf32> to vector<8x16xf32>
    %35 = vector.extract_strided_slice %32 {offsets = [0, 64], sizes = [8, 16], strides = [1, 1]} : vector<8x96xf32> to vector<8x16xf32>
    %36 = tpu.transpose %34, [1, 0] : vector<8x16xf32> -> vector<16x8xf32>
    %cst_17 = arith.constant dense<0.000000e+00> : vector<8x8xf32>
    %37 = tpu.matmul %33, %36, %cst_17 {dimension_numbers = #tpu.dot_dimension_numbers<[1], [0], [0], [1], [0, 0, 1, 1], [], []>} : vector<8x16xf32>, vector<16x8xf32>, vector<8x8xf32> -> vector<8x8xf32>
    %cst_18 = arith.constant 2.500000e-01 : f32
    %38 = vector.broadcast %cst_18 : f32 to vector<8x8xf32>
    %39 = arith.mulf %37, %38 : vector<8x8xf32>
    %cst_19 = arith.constant dense<0xFF800000> : vector<8xf32>
    %40 = vector.multi_reduction <maximumf>, %39, %cst_19 [1] : vector<8x8xf32> to vector<8xf32>
    %41 = vector.shape_cast %40 : vector<8xf32> to vector<8x1xf32>
    %42 = vector.broadcast %41 : vector<8x1xf32> to vector<8x8xf32>
    %43 = arith.subf %39, %42 : vector<8x8xf32>
    %44 = math.exp %43 : vector<8x8xf32>
    %cst_20 = arith.constant dense<0.000000e+00> : vector<8xf32>
    %45 = vector.multi_reduction <add>, %44, %cst_20 [1] : vector<8x8xf32> to vector<8xf32>
    %46 = vector.shape_cast %45 : vector<8xf32> to vector<8x1xf32>
    %47 = tpu.reciprocal %46 {approx = true} : vector<8x1xf32> -> vector<8x1xf32>
    %48 = vector.broadcast %47 : vector<8x1xf32> to vector<8x8xf32>
    %49 = arith.mulf %44, %48 : vector<8x8xf32>
    %cst_21 = arith.constant dense<0.000000e+00> : vector<8x16xf32>
    %50 = tpu.matmul %49, %35, %cst_21 {dimension_numbers = #tpu.dot_dimension_numbers<[1], [0], [0], [1], [0, 0, 1, 1], [], []>} : vector<8x8xf32>, vector<8x16xf32>, vector<8x16xf32> -> vector<8x16xf32>
    %51 = vector.extract_strided_slice %32 {offsets = [0, 16], sizes = [8, 16], strides = [1, 1]} : vector<8x96xf32> to vector<8x16xf32>
    %52 = vector.extract_strided_slice %32 {offsets = [0, 48], sizes = [8, 16], strides = [1, 1]} : vector<8x96xf32> to vector<8x16xf32>
    %53 = vector.extract_strided_slice %32 {offsets = [0, 80], sizes = [8, 16], strides = [1, 1]} : vector<8x96xf32> to vector<8x16xf32>
    %54 = tpu.transpose %52, [1, 0] : vector<8x16xf32> -> vector<16x8xf32>
    %cst_22 = arith.constant dense<0.000000e+00> : vector<8x8xf32>
    %55 = tpu.matmul %51, %54, %cst_22 {dimension_numbers = #tpu.dot_dimension_numbers<[1], [0], [0], [1], [0, 0, 1, 1], [], []>} : vector<8x16xf32>, vector<16x8xf32>, vector<8x8xf32> -> vector<8x8xf32>
    %cst_23 = arith.constant 2.500000e-01 : f32
    %56 = vector.broadcast %cst_23 : f32 to vector<8x8xf32>
    %57 = arith.mulf %55, %56 : vector<8x8xf32>
    %cst_24 = arith.constant dense<0xFF800000> : vector<8xf32>
    %58 = vector.multi_reduction <maximumf>, %57, %cst_24 [1] : vector<8x8xf32> to vector<8xf32>
    %59 = vector.shape_cast %58 : vector<8xf32> to vector<8x1xf32>
    %60 = vector.broadcast %59 : vector<8x1xf32> to vector<8x8xf32>
    %61 = arith.subf %57, %60 : vector<8x8xf32>
    %62 = math.exp %61 : vector<8x8xf32>
    %cst_25 = arith.constant dense<0.000000e+00> : vector<8xf32>
    %63 = vector.multi_reduction <add>, %62, %cst_25 [1] : vector<8x8xf32> to vector<8xf32>
    %64 = vector.shape_cast %63 : vector<8xf32> to vector<8x1xf32>
    %65 = tpu.reciprocal %64 {approx = true} : vector<8x1xf32> -> vector<8x1xf32>
    %66 = vector.broadcast %65 : vector<8x1xf32> to vector<8x8xf32>
    %67 = arith.mulf %62, %66 : vector<8x8xf32>
    %cst_26 = arith.constant dense<0.000000e+00> : vector<8x16xf32>
    %68 = tpu.matmul %67, %53, %cst_26 {dimension_numbers = #tpu.dot_dimension_numbers<[1], [0], [0], [1], [0, 0, 1, 1], [], []>} : vector<8x8xf32>, vector<8x16xf32>, vector<8x16xf32> -> vector<8x16xf32>
    %69 = tpu.concatenate %50, %68 in 1 : vector<8x16xf32>, vector<8x16xf32> -> vector<8x32xf32>
    %c0_27 = arith.constant 0 : index
    %c0_28 = arith.constant 0 : index
    %c0_29 = arith.constant 0 : index
    %70 = vector.load %arg6[%c0_27, %c0_28, %c0_29] : memref<2x32x32xf32, #tpu.memory_space<vmem>>, vector<1x32x32xf32>
    %71 = vector.shape_cast %70 : vector<1x32x32xf32> to vector<32x32xf32>
    %cst_30 = arith.constant dense<0.000000e+00> : vector<8x32xf32>
    %72 = tpu.matmul %69, %71, %cst_30 {dimension_numbers = #tpu.dot_dimension_numbers<[1], [0], [0], [1], [0, 0, 1, 1], [], []>} : vector<8x32xf32>, vector<32x32xf32>, vector<8x32xf32> -> vector<8x32xf32>
    %c0_31 = arith.constant 0 : index
    %c0_32 = arith.constant 0 : index
    %c0_33 = arith.constant 0 : index
    %73 = vector.load %arg7[%c0_31, %c0_32, %c0_33] : memref<2x1x32xf32, #tpu.memory_space<vmem>>, vector<1x1x32xf32>
    %74 = vector.shape_cast %73 : vector<1x1x32xf32> to vector<1x32xf32>
    %75 = vector.broadcast %74 : vector<1x32xf32> to vector<8x32xf32>
    %76 = arith.addf %72, %75 : vector<8x32xf32>
    %77 = arith.addf %25, %76 : vector<8x32xf32>
    %c0_34 = arith.constant 0 : index
    %c0_35 = arith.constant 0 : index
    %c0_36 = arith.constant 0 : index
    %78 = vector.load %arg8[%c0_34, %c0_35, %c0_36] : memref<2x1x32xf32, #tpu.memory_space<vmem>>, vector<1x1x32xf32>
    %79 = vector.shape_cast %78 : vector<1x1x32xf32> to vector<1x32xf32>
    %c0_37 = arith.constant 0 : index
    %c0_38 = arith.constant 0 : index
    %c0_39 = arith.constant 0 : index
    %80 = vector.load %arg9[%c0_37, %c0_38, %c0_39] : memref<2x1x32xf32, #tpu.memory_space<vmem>>, vector<1x1x32xf32>
    %81 = vector.shape_cast %80 : vector<1x1x32xf32> to vector<1x32xf32>
    %cst_40 = arith.constant dense<0.000000e+00> : vector<8xf32>
    %82 = vector.multi_reduction <add>, %77, %cst_40 [1] : vector<8x32xf32> to vector<8xf32>
    %83 = vector.shape_cast %82 : vector<8xf32> to vector<8x1xf32>
    %cst_41 = arith.constant 3.200000e+01 : f32
    %84 = vector.broadcast %cst_41 : f32 to vector<8x1xf32>
    %85 = arith.divf %83, %84 : vector<8x1xf32>
    %86 = vector.broadcast %85 : vector<8x1xf32> to vector<8x32xf32>
    %87 = arith.subf %77, %86 : vector<8x32xf32>
    %88 = arith.mulf %87, %87 : vector<8x32xf32>
    %cst_42 = arith.constant dense<0.000000e+00> : vector<8xf32>
    %89 = vector.multi_reduction <add>, %88, %cst_42 [1] : vector<8x32xf32> to vector<8xf32>
    %90 = vector.shape_cast %89 : vector<8xf32> to vector<8x1xf32>
    %cst_43 = arith.constant 3.200000e+01 : f32
    %91 = vector.broadcast %cst_43 : f32 to vector<8x1xf32>
    %92 = arith.divf %90, %91 : vector<8x1xf32>
    %93 = vector.broadcast %85 : vector<8x1xf32> to vector<8x32xf32>
    %94 = arith.subf %77, %93 : vector<8x32xf32>
    %cst_44 = arith.constant 9.99999996E-13 : f32
    %95 = vector.broadcast %cst_44 : f32 to vector<8x1xf32>
    %96 = arith.addf %92, %95 : vector<8x1xf32>
    %97 = math.rsqrt %96 : vector<8x1xf32>
    %98 = vector.broadcast %97 : vector<8x1xf32> to vector<8x32xf32>
    %99 = arith.mulf %94, %98 : vector<8x32xf32>
    %100 = vector.broadcast %79 : vector<1x32xf32> to vector<8x32xf32>
    %101 = arith.mulf %99, %100 : vector<8x32xf32>
    %102 = vector.broadcast %81 : vector<1x32xf32> to vector<8x32xf32>
    %103 = arith.addf %101, %102 : vector<8x32xf32>
    %c0_45 = arith.constant 0 : index
    %c0_46 = arith.constant 0 : index
    %c0_47 = arith.constant 0 : index
    %104 = vector.load %arg10[%c0_45, %c0_46, %c0_47] : memref<2x32x64xf32, #tpu.memory_space<vmem>>, vector<1x32x64xf32>
    %105 = vector.shape_cast %104 : vector<1x32x64xf32> to vector<32x64xf32>
    %cst_48 = arith.constant dense<0.000000e+00> : vector<8x64xf32>
    %106 = tpu.matmul %103, %105, %cst_48 {dimension_numbers = #tpu.dot_dimension_numbers<[1], [0], [0], [1], [0, 0, 1, 1], [], []>} : vector<8x32xf32>, vector<32x64xf32>, vector<8x64xf32> -> vector<8x64xf32>
    %c0_49 = arith.constant 0 : index
    %c0_50 = arith.constant 0 : index
    %c0_51 = arith.constant 0 : index
    %107 = vector.load %arg11[%c0_49, %c0_50, %c0_51] : memref<2x1x64xf32, #tpu.memory_space<vmem>>, vector<1x1x64xf32>
    %108 = vector.shape_cast %107 : vector<1x1x64xf32> to vector<1x64xf32>
    %109 = vector.broadcast %108 : vector<1x64xf32> to vector<8x64xf32>
    %110 = arith.addf %106, %109 : vector<8x64xf32>
    %cst_52 = arith.constant 5.000000e-01 : f32
    %111 = vector.broadcast %cst_52 : f32 to vector<8x64xf32>
    %112 = arith.mulf %111, %110 : vector<8x64xf32>
    %cst_53 = arith.constant 4.471500e-02 : f32
    %113 = vector.broadcast %cst_53 : f32 to vector<8x64xf32>
    %114 = arith.mulf %113, %110 : vector<8x64xf32>
    %115 = arith.mulf %114, %110 : vector<8x64xf32>
    %116 = arith.mulf %115, %110 : vector<8x64xf32>
    %117 = arith.addf %110, %116 : vector<8x64xf32>
    %cst_54 = arith.constant 0.797884583 : f32
    %118 = vector.broadcast %cst_54 : f32 to vector<8x64xf32>
    %119 = arith.mulf %118, %117 : vector<8x64xf32>
    %120 = math.tanh %119 : vector<8x64xf32>
    %cst_55 = arith.constant 1.000000e+00 : f32
    %121 = vector.broadcast %cst_55 : f32 to vector<8x64xf32>
    %122 = arith.addf %121, %120 : vector<8x64xf32>
    %123 = arith.mulf %112, %122 : vector<8x64xf32>
    %c0_56 = arith.constant 0 : index
    %c0_57 = arith.constant 0 : index
    %c0_58 = arith.constant 0 : index
    %124 = vector.load %arg12[%c0_56, %c0_57, %c0_58] : memref<2x64x32xf32, #tpu.memory_space<vmem>>, vector<1x64x32xf32>
    %125 = vector.shape_cast %124 : vector<1x64x32xf32> to vector<64x32xf32>
    %cst_59 = arith.constant dense<0.000000e+00> : vector<8x32xf32>
    %126 = tpu.matmul %123, %125, %cst_59 {dimension_numbers = #tpu.dot_dimension_numbers<[1], [0], [0], [1], [0, 0, 1, 1], [], []>} : vector<8x64xf32>, vector<64x32xf32>, vector<8x32xf32> -> vector<8x32xf32>
    %c0_60 = arith.constant 0 : index
    %c0_61 = arith.constant 0 : index
    %c0_62 = arith.constant 0 : index
    %127 = vector.load %arg13[%c0_60, %c0_61, %c0_62] : memref<2x1x32xf32, #tpu.memory_space<vmem>>, vector<1x1x32xf32>
    %128 = vector.shape_cast %127 : vector<1x1x32xf32> to vector<1x32xf32>
    %129 = vector.broadcast %128 : vector<1x32xf32> to vector<8x32xf32>
    %130 = arith.addf %126, %129 : vector<8x32xf32>
    %131 = arith.addf %103, %130 : vector<8x32xf32>
    %c0_63 = arith.constant 0 : index
    %c0_64 = arith.constant 0 : index
    %c0_65 = arith.constant 0 : index
    %132 = vector.load %arg14[%c0_63, %c0_64, %c0_65] : memref<2x1x32xf32, #tpu.memory_space<vmem>>, vector<1x1x32xf32>
    %133 = vector.shape_cast %132 : vector<1x1x32xf32> to vector<1x32xf32>
    %c0_66 = arith.constant 0 : index
    %c0_67 = arith.constant 0 : index
    %c0_68 = arith.constant 0 : index
    %134 = vector.load %arg15[%c0_66, %c0_67, %c0_68] : memref<2x1x32xf32, #tpu.memory_space<vmem>>, vector<1x1x32xf32>
    %135 = vector.shape_cast %134 : vector<1x1x32xf32> to vector<1x32xf32>
    %cst_69 = arith.constant dense<0.000000e+00> : vector<8xf32>
    %136 = vector.multi_reduction <add>, %131, %cst_69 [1] : vector<8x32xf32> to vector<8xf32>
    %137 = vector.shape_cast %136 : vector<8xf32> to vector<8x1xf32>
    %cst_70 = arith.constant 3.200000e+01 : f32
    %138 = vector.broadcast %cst_70 : f32 to vector<8x1xf32>
    %139 = arith.divf %137, %138 : vector<8x1xf32>
    %140 = vector.broadcast %139 : vector<8x1xf32> to vector<8x32xf32>
    %141 = arith.subf %131, %140 : vector<8x32xf32>
    %142 = arith.mulf %141, %141 : vector<8x32xf32>
    %cst_71 = arith.constant dense<0.000000e+00> : vector<8xf32>
    %143 = vector.multi_reduction <add>, %142, %cst_71 [1] : vector<8x32xf32> to vector<8xf32>
    %144 = vector.shape_cast %143 : vector<8xf32> to vector<8x1xf32>
    %cst_72 = arith.constant 3.200000e+01 : f32
    %145 = vector.broadcast %cst_72 : f32 to vector<8x1xf32>
    %146 = arith.divf %144, %145 : vector<8x1xf32>
    %147 = vector.broadcast %139 : vector<8x1xf32> to vector<8x32xf32>
    %148 = arith.subf %131, %147 : vector<8x32xf32>
    %cst_73 = arith.constant 9.99999996E-13 : f32
    %149 = vector.broadcast %cst_73 : f32 to vector<8x1xf32>
    %150 = arith.addf %146, %149 : vector<8x1xf32>
    %151 = math.rsqrt %150 : vector<8x1xf32>
    %152 = vector.broadcast %151 : vector<8x1xf32> to vector<8x32xf32>
    %153 = arith.mulf %148, %152 : vector<8x32xf32>
    %154 = vector.broadcast %133 : vector<1x32xf32> to vector<8x32xf32>
    %155 = arith.mulf %153, %154 : vector<8x32xf32>
    %156 = vector.broadcast %135 : vector<1x32xf32> to vector<8x32xf32>
    %157 = arith.addf %155, %156 : vector<8x32xf32>
    %c1 = arith.constant 1 : index
    %c0_74 = arith.constant 0 : index
    %c0_75 = arith.constant 0 : index
    %158 = vector.load %arg4[%c1, %c0_74, %c0_75] : memref<2x32x96xf32, #tpu.memory_space<vmem>>, vector<1x32x96xf32>
    %159 = vector.shape_cast %158 : vector<1x32x96xf32> to vector<32x96xf32>
    %cst_76 = arith.constant dense<0.000000e+00> : vector<8x96xf32>
    %160 = tpu.matmul %157, %159, %cst_76 {dimension_numbers = #tpu.dot_dimension_numbers<[1], [0], [0], [1], [0, 0, 1, 1], [], []>} : vector<8x32xf32>, vector<32x96xf32>, vector<8x96xf32> -> vector<8x96xf32>
    %c1_77 = arith.constant 1 : index
    %c0_78 = arith.constant 0 : index
    %c0_79 = arith.constant 0 : index
    %161 = vector.load %arg5[%c1_77, %c0_78, %c0_79] : memref<2x1x96xf32, #tpu.memory_space<vmem>>, vector<1x1x96xf32>
    %162 = vector.shape_cast %161 : vector<1x1x96xf32> to vector<1x96xf32>
    %163 = vector.broadcast %162 : vector<1x96xf32> to vector<8x96xf32>
    %164 = arith.addf %160, %163 : vector<8x96xf32>
    %165 = vector.extract_strided_slice %164 {offsets = [0, 0], sizes = [8, 16], strides = [1, 1]} : vector<8x96xf32> to vector<8x16xf32>
    %166 = vector.extract_strided_slice %164 {offsets = [0, 32], sizes = [8, 16], strides = [1, 1]} : vector<8x96xf32> to vector<8x16xf32>
    %167 = vector.extract_strided_slice %164 {offsets = [0, 64], sizes = [8, 16], strides = [1, 1]} : vector<8x96xf32> to vector<8x16xf32>
    %168 = tpu.transpose %166, [1, 0] : vector<8x16xf32> -> vector<16x8xf32>
    %cst_80 = arith.constant dense<0.000000e+00> : vector<8x8xf32>
    %169 = tpu.matmul %165, %168, %cst_80 {dimension_numbers = #tpu.dot_dimension_numbers<[1], [0], [0], [1], [0, 0, 1, 1], [], []>} : vector<8x16xf32>, vector<16x8xf32>, vector<8x8xf32> -> vector<8x8xf32>
    %cst_81 = arith.constant 2.500000e-01 : f32
    %170 = vector.broadcast %cst_81 : f32 to vector<8x8xf32>
    %171 = arith.mulf %169, %170 : vector<8x8xf32>
    %cst_82 = arith.constant dense<0xFF800000> : vector<8xf32>
    %172 = vector.multi_reduction <maximumf>, %171, %cst_82 [1] : vector<8x8xf32> to vector<8xf32>
    %173 = vector.shape_cast %172 : vector<8xf32> to vector<8x1xf32>
    %174 = vector.broadcast %173 : vector<8x1xf32> to vector<8x8xf32>
    %175 = arith.subf %171, %174 : vector<8x8xf32>
    %176 = math.exp %175 : vector<8x8xf32>
    %cst_83 = arith.constant dense<0.000000e+00> : vector<8xf32>
    %177 = vector.multi_reduction <add>, %176, %cst_83 [1] : vector<8x8xf32> to vector<8xf32>
    %178 = vector.shape_cast %177 : vector<8xf32> to vector<8x1xf32>
    %179 = tpu.reciprocal %178 {approx = true} : vector<8x1xf32> -> vector<8x1xf32>
    %180 = vector.broadcast %179 : vector<8x1xf32> to vector<8x8xf32>
    %181 = arith.mulf %176, %180 : vector<8x8xf32>
    %cst_84 = arith.constant dense<0.000000e+00> : vector<8x16xf32>
    %182 = tpu.matmul %181, %167, %cst_84 {dimension_numbers = #tpu.dot_dimension_numbers<[1], [0], [0], [1], [0, 0, 1, 1], [], []>} : vector<8x8xf32>, vector<8x16xf32>, vector<8x16xf32> -> vector<8x16xf32>
    %183 = vector.extract_strided_slice %164 {offsets = [0, 16], sizes = [8, 16], strides = [1, 1]} : vector<8x96xf32> to vector<8x16xf32>
    %184 = vector.extract_strided_slice %164 {offsets = [0, 48], sizes = [8, 16], strides = [1, 1]} : vector<8x96xf32> to vector<8x16xf32>
    %185 = vector.extract_strided_slice %164 {offsets = [0, 80], sizes = [8, 16], strides = [1, 1]} : vector<8x96xf32> to vector<8x16xf32>
    %186 = tpu.transpose %184, [1, 0] : vector<8x16xf32> -> vector<16x8xf32>
    %cst_85 = arith.constant dense<0.000000e+00> : vector<8x8xf32>
    %187 = tpu.matmul %183, %186, %cst_85 {dimension_numbers = #tpu.dot_dimension_numbers<[1], [0], [0], [1], [0, 0, 1, 1], [], []>} : vector<8x16xf32>, vector<16x8xf32>, vector<8x8xf32> -> vector<8x8xf32>
    %cst_86 = arith.constant 2.500000e-01 : f32
    %188 = vector.broadcast %cst_86 : f32 to vector<8x8xf32>
    %189 = arith.mulf %187, %188 : vector<8x8xf32>
    %cst_87 = arith.constant dense<0xFF800000> : vector<8xf32>
    %190 = vector.multi_reduction <maximumf>, %189, %cst_87 [1] : vector<8x8xf32> to vector<8xf32>
    %191 = vector.shape_cast %190 : vector<8xf32> to vector<8x1xf32>
    %192 = vector.broadcast %191 : vector<8x1xf32> to vector<8x8xf32>
    %193 = arith.subf %189, %192 : vector<8x8xf32>
    %194 = math.exp %193 : vector<8x8xf32>
    %cst_88 = arith.constant dense<0.000000e+00> : vector<8xf32>
    %195 = vector.multi_reduction <add>, %194, %cst_88 [1] : vector<8x8xf32> to vector<8xf32>
    %196 = vector.shape_cast %195 : vector<8xf32> to vector<8x1xf32>
    %197 = tpu.reciprocal %196 {approx = true} : vector<8x1xf32> -> vector<8x1xf32>
    %198 = vector.broadcast %197 : vector<8x1xf32> to vector<8x8xf32>
    %199 = arith.mulf %194, %198 : vector<8x8xf32>
    %cst_89 = arith.constant dense<0.000000e+00> : vector<8x16xf32>
    %200 = tpu.matmul %199, %185, %cst_89 {dimension_numbers = #tpu.dot_dimension_numbers<[1], [0], [0], [1], [0, 0, 1, 1], [], []>} : vector<8x8xf32>, vector<8x16xf32>, vector<8x16xf32> -> vector<8x16xf32>
    %201 = tpu.concatenate %182, %200 in 1 : vector<8x16xf32>, vector<8x16xf32> -> vector<8x32xf32>
    %c1_90 = arith.constant 1 : index
    %c0_91 = arith.constant 0 : index
    %c0_92 = arith.constant 0 : index
    %202 = vector.load %arg6[%c1_90, %c0_91, %c0_92] : memref<2x32x32xf32, #tpu.memory_space<vmem>>, vector<1x32x32xf32>
    %203 = vector.shape_cast %202 : vector<1x32x32xf32> to vector<32x32xf32>
    %cst_93 = arith.constant dense<0.000000e+00> : vector<8x32xf32>
    %204 = tpu.matmul %201, %203, %cst_93 {dimension_numbers = #tpu.dot_dimension_numbers<[1], [0], [0], [1], [0, 0, 1, 1], [], []>} : vector<8x32xf32>, vector<32x32xf32>, vector<8x32xf32> -> vector<8x32xf32>
    %c1_94 = arith.constant 1 : index
    %c0_95 = arith.constant 0 : index
    %c0_96 = arith.constant 0 : index
    %205 = vector.load %arg7[%c1_94, %c0_95, %c0_96] : memref<2x1x32xf32, #tpu.memory_space<vmem>>, vector<1x1x32xf32>
    %206 = vector.shape_cast %205 : vector<1x1x32xf32> to vector<1x32xf32>
    %207 = vector.broadcast %206 : vector<1x32xf32> to vector<8x32xf32>
    %208 = arith.addf %204, %207 : vector<8x32xf32>
    %209 = arith.addf %157, %208 : vector<8x32xf32>
    %c1_97 = arith.constant 1 : index
    %c0_98 = arith.constant 0 : index
    %c0_99 = arith.constant 0 : index
    %210 = vector.load %arg8[%c1_97, %c0_98, %c0_99] : memref<2x1x32xf32, #tpu.memory_space<vmem>>, vector<1x1x32xf32>
    %211 = vector.shape_cast %210 : vector<1x1x32xf32> to vector<1x32xf32>
    %c1_100 = arith.constant 1 : index
    %c0_101 = arith.constant 0 : index
    %c0_102 = arith.constant 0 : index
    %212 = vector.load %arg9[%c1_100, %c0_101, %c0_102] : memref<2x1x32xf32, #tpu.memory_space<vmem>>, vector<1x1x32xf32>
    %213 = vector.shape_cast %212 : vector<1x1x32xf32> to vector<1x32xf32>
    %cst_103 = arith.constant dense<0.000000e+00> : vector<8xf32>
    %214 = vector.multi_reduction <add>, %209, %cst_103 [1] : vector<8x32xf32> to vector<8xf32>
    %215 = vector.shape_cast %214 : vector<8xf32> to vector<8x1xf32>
    %cst_104 = arith.constant 3.200000e+01 : f32
    %216 = vector.broadcast %cst_104 : f32 to vector<8x1xf32>
    %217 = arith.divf %215, %216 : vector<8x1xf32>
    %218 = vector.broadcast %217 : vector<8x1xf32> to vector<8x32xf32>
    %219 = arith.subf %209, %218 : vector<8x32xf32>
    %220 = arith.mulf %219, %219 : vector<8x32xf32>
    %cst_105 = arith.constant dense<0.000000e+00> : vector<8xf32>
    %221 = vector.multi_reduction <add>, %220, %cst_105 [1] : vector<8x32xf32> to vector<8xf32>
    %222 = vector.shape_cast %221 : vector<8xf32> to vector<8x1xf32>
    %cst_106 = arith.constant 3.200000e+01 : f32
    %223 = vector.broadcast %cst_106 : f32 to vector<8x1xf32>
    %224 = arith.divf %222, %223 : vector<8x1xf32>
    %225 = vector.broadcast %217 : vector<8x1xf32> to vector<8x32xf32>
    %226 = arith.subf %209, %225 : vector<8x32xf32>
    %cst_107 = arith.constant 9.99999996E-13 : f32
    %227 = vector.broadcast %cst_107 : f32 to vector<8x1xf32>
    %228 = arith.addf %224, %227 : vector<8x1xf32>
    %229 = math.rsqrt %228 : vector<8x1xf32>
    %230 = vector.broadcast %229 : vector<8x1xf32> to vector<8x32xf32>
    %231 = arith.mulf %226, %230 : vector<8x32xf32>
    %232 = vector.broadcast %211 : vector<1x32xf32> to vector<8x32xf32>
    %233 = arith.mulf %231, %232 : vector<8x32xf32>
    %234 = vector.broadcast %213 : vector<1x32xf32> to vector<8x32xf32>
    %235 = arith.addf %233, %234 : vector<8x32xf32>
    %c1_108 = arith.constant 1 : index
    %c0_109 = arith.constant 0 : index
    %c0_110 = arith.constant 0 : index
    %236 = vector.load %arg10[%c1_108, %c0_109, %c0_110] : memref<2x32x64xf32, #tpu.memory_space<vmem>>, vector<1x32x64xf32>
    %237 = vector.shape_cast %236 : vector<1x32x64xf32> to vector<32x64xf32>
    %cst_111 = arith.constant dense<0.000000e+00> : vector<8x64xf32>
    %238 = tpu.matmul %235, %237, %cst_111 {dimension_numbers = #tpu.dot_dimension_numbers<[1], [0], [0], [1], [0, 0, 1, 1], [], []>} : vector<8x32xf32>, vector<32x64xf32>, vector<8x64xf32> -> vector<8x64xf32>
    %c1_112 = arith.constant 1 : index
    %c0_113 = arith.constant 0 : index
    %c0_114 = arith.constant 0 : index
    %239 = vector.load %arg11[%c1_112, %c0_113, %c0_114] : memref<2x1x64xf32, #tpu.memory_space<vmem>>, vector<1x1x64xf32>
    %240 = vector.shape_cast %239 : vector<1x1x64xf32> to vector<1x64xf32>
    %241 = vector.broadcast %240 : vector<1x64xf32> to vector<8x64xf32>
    %242 = arith.addf %238, %241 : vector<8x64xf32>
    %cst_115 = arith.constant 5.000000e-01 : f32
    %243 = vector.broadcast %cst_115 : f32 to vector<8x64xf32>
    %244 = arith.mulf %243, %242 : vector<8x64xf32>
    %cst_116 = arith.constant 4.471500e-02 : f32
    %245 = vector.broadcast %cst_116 : f32 to vector<8x64xf32>
    %246 = arith.mulf %245, %242 : vector<8x64xf32>
    %247 = arith.mulf %246, %242 : vector<8x64xf32>
    %248 = arith.mulf %247, %242 : vector<8x64xf32>
    %249 = arith.addf %242, %248 : vector<8x64xf32>
    %cst_117 = arith.constant 0.797884583 : f32
    %250 = vector.broadcast %cst_117 : f32 to vector<8x64xf32>
    %251 = arith.mulf %250, %249 : vector<8x64xf32>
    %252 = math.tanh %251 : vector<8x64xf32>
    %cst_118 = arith.constant 1.000000e+00 : f32
    %253 = vector.broadcast %cst_118 : f32 to vector<8x64xf32>
    %254 = arith.addf %253, %252 : vector<8x64xf32>
    %255 = arith.mulf %244, %254 : vector<8x64xf32>
    %c1_119 = arith.constant 1 : index
    %c0_120 = arith.constant 0 : index
    %c0_121 = arith.constant 0 : index
    %256 = vector.load %arg12[%c1_119, %c0_120, %c0_121] : memref<2x64x32xf32, #tpu.memory_space<vmem>>, vector<1x64x32xf32>
    %257 = vector.shape_cast %256 : vector<1x64x32xf32> to vector<64x32xf32>
    %cst_122 = arith.constant dense<0.000000e+00> : vector<8x32xf32>
    %258 = tpu.matmul %255, %257, %cst_122 {dimension_numbers = #tpu.dot_dimension_numbers<[1], [0], [0], [1], [0, 0, 1, 1], [], []>} : vector<8x64xf32>, vector<64x32xf32>, vector<8x32xf32> -> vector<8x32xf32>
    %c1_123 = arith.constant 1 : index
    %c0_124 = arith.constant 0 : index
    %c0_125 = arith.constant 0 : index
    %259 = vector.load %arg13[%c1_123, %c0_124, %c0_125] : memref<2x1x32xf32, #tpu.memory_space<vmem>>, vector<1x1x32xf32>
    %260 = vector.shape_cast %259 : vector<1x1x32xf32> to vector<1x32xf32>
    %261 = vector.broadcast %260 : vector<1x32xf32> to vector<8x32xf32>
    %262 = arith.addf %258, %261 : vector<8x32xf32>
    %263 = arith.addf %235, %262 : vector<8x32xf32>
    %c1_126 = arith.constant 1 : index
    %c0_127 = arith.constant 0 : index
    %c0_128 = arith.constant 0 : index
    %264 = vector.load %arg14[%c1_126, %c0_127, %c0_128] : memref<2x1x32xf32, #tpu.memory_space<vmem>>, vector<1x1x32xf32>
    %265 = vector.shape_cast %264 : vector<1x1x32xf32> to vector<1x32xf32>
    %c1_129 = arith.constant 1 : index
    %c0_130 = arith.constant 0 : index
    %c0_131 = arith.constant 0 : index
    %266 = vector.load %arg15[%c1_129, %c0_130, %c0_131] : memref<2x1x32xf32, #tpu.memory_space<vmem>>, vector<1x1x32xf32>
    %267 = vector.shape_cast %266 : vector<1x1x32xf32> to vector<1x32xf32>
    %cst_132 = arith.constant dense<0.000000e+00> : vector<8xf32>
    %268 = vector.multi_reduction <add>, %263, %cst_132 [1] : vector<8x32xf32> to vector<8xf32>
    %269 = vector.shape_cast %268 : vector<8xf32> to vector<8x1xf32>
    %cst_133 = arith.constant 3.200000e+01 : f32
    %270 = vector.broadcast %cst_133 : f32 to vector<8x1xf32>
    %271 = arith.divf %269, %270 : vector<8x1xf32>
    %272 = vector.broadcast %271 : vector<8x1xf32> to vector<8x32xf32>
    %273 = arith.subf %263, %272 : vector<8x32xf32>
    %274 = arith.mulf %273, %273 : vector<8x32xf32>
    %cst_134 = arith.constant dense<0.000000e+00> : vector<8xf32>
    %275 = vector.multi_reduction <add>, %274, %cst_134 [1] : vector<8x32xf32> to vector<8xf32>
    %276 = vector.shape_cast %275 : vector<8xf32> to vector<8x1xf32>
    %cst_135 = arith.constant 3.200000e+01 : f32
    %277 = vector.broadcast %cst_135 : f32 to vector<8x1xf32>
    %278 = arith.divf %276, %277 : vector<8x1xf32>
    %279 = vector.broadcast %271 : vector<8x1xf32> to vector<8x32xf32>
    %280 = arith.subf %263, %279 : vector<8x32xf32>
    %cst_136 = arith.constant 9.99999996E-13 : f32
    %281 = vector.broadcast %cst_136 : f32 to vector<8x1xf32>
    %282 = arith.addf %278, %281 : vector<8x1xf32>
    %283 = math.rsqrt %282 : vector<8x1xf32>
    %284 = vector.broadcast %283 : vector<8x1xf32> to vector<8x32xf32>
    %285 = arith.mulf %280, %284 : vector<8x32xf32>
    %286 = vector.broadcast %265 : vector<1x32xf32> to vector<8x32xf32>
    %287 = arith.mulf %285, %286 : vector<8x32xf32>
    %288 = vector.broadcast %267 : vector<1x32xf32> to vector<8x32xf32>
    %289 = arith.addf %287, %288 : vector<8x32xf32>
    %c0_137 = arith.constant 0 : index
    %c0_138 = arith.constant 0 : index
    %290 = vector.load %arg16[%c0_137, %c0_138] : memref<32x128xf32, #tpu.memory_space<vmem>>, vector<32x128xf32>
    %c0_139 = arith.constant 0 : index
    %c0_140 = arith.constant 0 : index
    %291 = vector.load %arg17[%c0_139, %c0_140] : memref<32x128xf32, #tpu.memory_space<vmem>>, vector<32x128xf32>
    %c0_141 = arith.constant 0 : index
    %c0_142 = arith.constant 0 : index
    %292 = vector.load %arg18[%c0_141, %c0_142] : memref<1x128xf32, #tpu.memory_space<vmem>>, vector<1x128xf32>
    %cst_143 = arith.constant dense<0.000000e+00> : vector<8x128xf32>
    %293 = tpu.matmul %289, %290, %cst_143 {dimension_numbers = #tpu.dot_dimension_numbers<[1], [0], [0], [1], [0, 0, 1, 1], [], []>} : vector<8x32xf32>, vector<32x128xf32>, vector<8x128xf32> -> vector<8x128xf32>
    %294 = vector.broadcast %292 : vector<1x128xf32> to vector<8x128xf32>
    %295 = arith.addf %293, %294 : vector<8x128xf32>
    %cst_144 = arith.constant 0.000000e+00 : f32
    %296 = vector.broadcast %cst_144 : f32 to vector<1x32xf32>
    %cst_145 = arith.constant 0.000000e+00 : f32
    %297 = vector.broadcast %cst_145 : f32 to vector<1x32xf32>
    %298 = vector.extract_strided_slice %295 {offsets = [0, 0], sizes = [1, 128], strides = [1, 1]} : vector<8x128xf32> to vector<1x128xf32>
    %cst_146 = arith.constant dense<0.000000e+00> : vector<1x128xf32>
    %299 = tpu.matmul %296, %291, %cst_146 {dimension_numbers = #tpu.dot_dimension_numbers<[1], [0], [0], [1], [0, 0, 1, 1], [], []>} : vector<1x32xf32>, vector<32x128xf32>, vector<1x128xf32> -> vector<1x128xf32>
    %300 = arith.addf %298, %299 : vector<1x128xf32>
    %301 = vector.extract_strided_slice %300 {offsets = [0, 0], sizes = [1, 32], strides = [1, 1]} : vector<1x128xf32> to vector<1x32xf32>
    %302 = arith.negf %301 : vector<1x32xf32>
    %303 = math.exp %302 : vector<1x32xf32>
    %cst_147 = arith.constant 1.000000e+00 : f32
    %304 = vector.broadcast %cst_147 : f32 to vector<1x32xf32>
    %305 = arith.addf %304, %303 : vector<1x32xf32>
    %306 = arith.divf %304, %305 : vector<1x32xf32>
    %307 = vector.extract_strided_slice %300 {offsets = [0, 32], sizes = [1, 32], strides = [1, 1]} : vector<1x128xf32> to vector<1x32xf32>
    %308 = arith.negf %307 : vector<1x32xf32>
    %309 = math.exp %308 : vector<1x32xf32>
    %cst_148 = arith.constant 1.000000e+00 : f32
    %310 = vector.broadcast %cst_148 : f32 to vector<1x32xf32>
    %311 = arith.addf %310, %309 : vector<1x32xf32>
    %312 = arith.divf %310, %311 : vector<1x32xf32>
    %313 = vector.extract_strided_slice %300 {offsets = [0, 64], sizes = [1, 32], strides = [1, 1]} : vector<1x128xf32> to vector<1x32xf32>
    %314 = math.tanh %313 : vector<1x32xf32>
    %315 = vector.extract_strided_slice %300 {offsets = [0, 96], sizes = [1, 32], strides = [1, 1]} : vector<1x128xf32> to vector<1x32xf32>
    %316 = arith.negf %315 : vector<1x32xf32>
    %317 = math.exp %316 : vector<1x32xf32>
    %cst_149 = arith.constant 1.000000e+00 : f32
    %318 = vector.broadcast %cst_149 : f32 to vector<1x32xf32>
    %319 = arith.addf %318, %317 : vector<1x32xf32>
    %320 = arith.divf %318, %319 : vector<1x32xf32>
    %321 = arith.mulf %312, %297 : vector<1x32xf32>
    %322 = arith.mulf %306, %314 : vector<1x32xf32>
    %323 = arith.addf %321, %322 : vector<1x32xf32>
    %324 = math.tanh %323 : vector<1x32xf32>
    %325 = arith.mulf %320, %324 : vector<1x32xf32>
    %326 = vector.extract_strided_slice %295 {offsets = [1, 0], sizes = [1, 128], strides = [1, 1]} : vector<8x128xf32> to vector<1x128xf32>
    %cst_150 = arith.constant dense<0.000000e+00> : vector<1x128xf32>
    %327 = tpu.matmul %325, %291, %cst_150 {dimension_numbers = #tpu.dot_dimension_numbers<[1], [0], [0], [1], [0, 0, 1, 1], [], []>} : vector<1x32xf32>, vector<32x128xf32>, vector<1x128xf32> -> vector<1x128xf32>
    %328 = arith.addf %326, %327 : vector<1x128xf32>
    %329 = vector.extract_strided_slice %328 {offsets = [0, 0], sizes = [1, 32], strides = [1, 1]} : vector<1x128xf32> to vector<1x32xf32>
    %330 = arith.negf %329 : vector<1x32xf32>
    %331 = math.exp %330 : vector<1x32xf32>
    %cst_151 = arith.constant 1.000000e+00 : f32
    %332 = vector.broadcast %cst_151 : f32 to vector<1x32xf32>
    %333 = arith.addf %332, %331 : vector<1x32xf32>
    %334 = arith.divf %332, %333 : vector<1x32xf32>
    %335 = vector.extract_strided_slice %328 {offsets = [0, 32], sizes = [1, 32], strides = [1, 1]} : vector<1x128xf32> to vector<1x32xf32>
    %336 = arith.negf %335 : vector<1x32xf32>
    %337 = math.exp %336 : vector<1x32xf32>
    %cst_152 = arith.constant 1.000000e+00 : f32
    %338 = vector.broadcast %cst_152 : f32 to vector<1x32xf32>
    %339 = arith.addf %338, %337 : vector<1x32xf32>
    %340 = arith.divf %338, %339 : vector<1x32xf32>
    %341 = vector.extract_strided_slice %328 {offsets = [0, 64], sizes = [1, 32], strides = [1, 1]} : vector<1x128xf32> to vector<1x32xf32>
    %342 = math.tanh %341 : vector<1x32xf32>
    %343 = vector.extract_strided_slice %328 {offsets = [0, 96], sizes = [1, 32], strides = [1, 1]} : vector<1x128xf32> to vector<1x32xf32>
    %344 = arith.negf %343 : vector<1x32xf32>
    %345 = math.exp %344 : vector<1x32xf32>
    %cst_153 = arith.constant 1.000000e+00 : f32
    %346 = vector.broadcast %cst_153 : f32 to vector<1x32xf32>
    %347 = arith.addf %346, %345 : vector<1x32xf32>
    %348 = arith.divf %346, %347 : vector<1x32xf32>
    %349 = arith.mulf %340, %323 : vector<1x32xf32>
    %350 = arith.mulf %334, %342 : vector<1x32xf32>
    %351 = arith.addf %349, %350 : vector<1x32xf32>
    %352 = math.tanh %351 : vector<1x32xf32>
    %353 = arith.mulf %348, %352 : vector<1x32xf32>
    %354 = vector.extract_strided_slice %295 {offsets = [2, 0], sizes = [1, 128], strides = [1, 1]} : vector<8x128xf32> to vector<1x128xf32>
    %cst_154 = arith.constant dense<0.000000e+00> : vector<1x128xf32>
    %355 = tpu.matmul %353, %291, %cst_154 {dimension_numbers = #tpu.dot_dimension_numbers<[1], [0], [0], [1], [0, 0, 1, 1], [], []>} : vector<1x32xf32>, vector<32x128xf32>, vector<1x128xf32> -> vector<1x128xf32>
    %356 = arith.addf %354, %355 : vector<1x128xf32>
    %357 = vector.extract_strided_slice %356 {offsets = [0, 0], sizes = [1, 32], strides = [1, 1]} : vector<1x128xf32> to vector<1x32xf32>
    %358 = arith.negf %357 : vector<1x32xf32>
    %359 = math.exp %358 : vector<1x32xf32>
    %cst_155 = arith.constant 1.000000e+00 : f32
    %360 = vector.broadcast %cst_155 : f32 to vector<1x32xf32>
    %361 = arith.addf %360, %359 : vector<1x32xf32>
    %362 = arith.divf %360, %361 : vector<1x32xf32>
    %363 = vector.extract_strided_slice %356 {offsets = [0, 32], sizes = [1, 32], strides = [1, 1]} : vector<1x128xf32> to vector<1x32xf32>
    %364 = arith.negf %363 : vector<1x32xf32>
    %365 = math.exp %364 : vector<1x32xf32>
    %cst_156 = arith.constant 1.000000e+00 : f32
    %366 = vector.broadcast %cst_156 : f32 to vector<1x32xf32>
    %367 = arith.addf %366, %365 : vector<1x32xf32>
    %368 = arith.divf %366, %367 : vector<1x32xf32>
    %369 = vector.extract_strided_slice %356 {offsets = [0, 64], sizes = [1, 32], strides = [1, 1]} : vector<1x128xf32> to vector<1x32xf32>
    %370 = math.tanh %369 : vector<1x32xf32>
    %371 = vector.extract_strided_slice %356 {offsets = [0, 96], sizes = [1, 32], strides = [1, 1]} : vector<1x128xf32> to vector<1x32xf32>
    %372 = arith.negf %371 : vector<1x32xf32>
    %373 = math.exp %372 : vector<1x32xf32>
    %cst_157 = arith.constant 1.000000e+00 : f32
    %374 = vector.broadcast %cst_157 : f32 to vector<1x32xf32>
    %375 = arith.addf %374, %373 : vector<1x32xf32>
    %376 = arith.divf %374, %375 : vector<1x32xf32>
    %377 = arith.mulf %368, %351 : vector<1x32xf32>
    %378 = arith.mulf %362, %370 : vector<1x32xf32>
    %379 = arith.addf %377, %378 : vector<1x32xf32>
    %380 = math.tanh %379 : vector<1x32xf32>
    %381 = arith.mulf %376, %380 : vector<1x32xf32>
    %382 = vector.extract_strided_slice %295 {offsets = [3, 0], sizes = [1, 128], strides = [1, 1]} : vector<8x128xf32> to vector<1x128xf32>
    %cst_158 = arith.constant dense<0.000000e+00> : vector<1x128xf32>
    %383 = tpu.matmul %381, %291, %cst_158 {dimension_numbers = #tpu.dot_dimension_numbers<[1], [0], [0], [1], [0, 0, 1, 1], [], []>} : vector<1x32xf32>, vector<32x128xf32>, vector<1x128xf32> -> vector<1x128xf32>
    %384 = arith.addf %382, %383 : vector<1x128xf32>
    %385 = vector.extract_strided_slice %384 {offsets = [0, 0], sizes = [1, 32], strides = [1, 1]} : vector<1x128xf32> to vector<1x32xf32>
    %386 = arith.negf %385 : vector<1x32xf32>
    %387 = math.exp %386 : vector<1x32xf32>
    %cst_159 = arith.constant 1.000000e+00 : f32
    %388 = vector.broadcast %cst_159 : f32 to vector<1x32xf32>
    %389 = arith.addf %388, %387 : vector<1x32xf32>
    %390 = arith.divf %388, %389 : vector<1x32xf32>
    %391 = vector.extract_strided_slice %384 {offsets = [0, 32], sizes = [1, 32], strides = [1, 1]} : vector<1x128xf32> to vector<1x32xf32>
    %392 = arith.negf %391 : vector<1x32xf32>
    %393 = math.exp %392 : vector<1x32xf32>
    %cst_160 = arith.constant 1.000000e+00 : f32
    %394 = vector.broadcast %cst_160 : f32 to vector<1x32xf32>
    %395 = arith.addf %394, %393 : vector<1x32xf32>
    %396 = arith.divf %394, %395 : vector<1x32xf32>
    %397 = vector.extract_strided_slice %384 {offsets = [0, 64], sizes = [1, 32], strides = [1, 1]} : vector<1x128xf32> to vector<1x32xf32>
    %398 = math.tanh %397 : vector<1x32xf32>
    %399 = vector.extract_strided_slice %384 {offsets = [0, 96], sizes = [1, 32], strides = [1, 1]} : vector<1x128xf32> to vector<1x32xf32>
    %400 = arith.negf %399 : vector<1x32xf32>
    %401 = math.exp %400 : vector<1x32xf32>
    %cst_161 = arith.constant 1.000000e+00 : f32
    %402 = vector.broadcast %cst_161 : f32 to vector<1x32xf32>
    %403 = arith.addf %402, %401 : vector<1x32xf32>
    %404 = arith.divf %402, %403 : vector<1x32xf32>
    %405 = arith.mulf %396, %379 : vector<1x32xf32>
    %406 = arith.mulf %390, %398 : vector<1x32xf32>
    %407 = arith.addf %405, %406 : vector<1x32xf32>
    %408 = math.tanh %407 : vector<1x32xf32>
    %409 = arith.mulf %404, %408 : vector<1x32xf32>
    %410 = vector.extract_strided_slice %295 {offsets = [4, 0], sizes = [1, 128], strides = [1, 1]} : vector<8x128xf32> to vector<1x128xf32>
    %cst_162 = arith.constant dense<0.000000e+00> : vector<1x128xf32>
    %411 = tpu.matmul %409, %291, %cst_162 {dimension_numbers = #tpu.dot_dimension_numbers<[1], [0], [0], [1], [0, 0, 1, 1], [], []>} : vector<1x32xf32>, vector<32x128xf32>, vector<1x128xf32> -> vector<1x128xf32>
    %412 = arith.addf %410, %411 : vector<1x128xf32>
    %413 = vector.extract_strided_slice %412 {offsets = [0, 0], sizes = [1, 32], strides = [1, 1]} : vector<1x128xf32> to vector<1x32xf32>
    %414 = arith.negf %413 : vector<1x32xf32>
    %415 = math.exp %414 : vector<1x32xf32>
    %cst_163 = arith.constant 1.000000e+00 : f32
    %416 = vector.broadcast %cst_163 : f32 to vector<1x32xf32>
    %417 = arith.addf %416, %415 : vector<1x32xf32>
    %418 = arith.divf %416, %417 : vector<1x32xf32>
    %419 = vector.extract_strided_slice %412 {offsets = [0, 32], sizes = [1, 32], strides = [1, 1]} : vector<1x128xf32> to vector<1x32xf32>
    %420 = arith.negf %419 : vector<1x32xf32>
    %421 = math.exp %420 : vector<1x32xf32>
    %cst_164 = arith.constant 1.000000e+00 : f32
    %422 = vector.broadcast %cst_164 : f32 to vector<1x32xf32>
    %423 = arith.addf %422, %421 : vector<1x32xf32>
    %424 = arith.divf %422, %423 : vector<1x32xf32>
    %425 = vector.extract_strided_slice %412 {offsets = [0, 64], sizes = [1, 32], strides = [1, 1]} : vector<1x128xf32> to vector<1x32xf32>
    %426 = math.tanh %425 : vector<1x32xf32>
    %427 = vector.extract_strided_slice %412 {offsets = [0, 96], sizes = [1, 32], strides = [1, 1]} : vector<1x128xf32> to vector<1x32xf32>
    %428 = arith.negf %427 : vector<1x32xf32>
    %429 = math.exp %428 : vector<1x32xf32>
    %cst_165 = arith.constant 1.000000e+00 : f32
    %430 = vector.broadcast %cst_165 : f32 to vector<1x32xf32>
    %431 = arith.addf %430, %429 : vector<1x32xf32>
    %432 = arith.divf %430, %431 : vector<1x32xf32>
    %433 = arith.mulf %424, %407 : vector<1x32xf32>
    %434 = arith.mulf %418, %426 : vector<1x32xf32>
    %435 = arith.addf %433, %434 : vector<1x32xf32>
    %436 = math.tanh %435 : vector<1x32xf32>
    %437 = arith.mulf %432, %436 : vector<1x32xf32>
    %438 = vector.extract_strided_slice %295 {offsets = [5, 0], sizes = [1, 128], strides = [1, 1]} : vector<8x128xf32> to vector<1x128xf32>
    %cst_166 = arith.constant dense<0.000000e+00> : vector<1x128xf32>
    %439 = tpu.matmul %437, %291, %cst_166 {dimension_numbers = #tpu.dot_dimension_numbers<[1], [0], [0], [1], [0, 0, 1, 1], [], []>} : vector<1x32xf32>, vector<32x128xf32>, vector<1x128xf32> -> vector<1x128xf32>
    %440 = arith.addf %438, %439 : vector<1x128xf32>
    %441 = vector.extract_strided_slice %440 {offsets = [0, 0], sizes = [1, 32], strides = [1, 1]} : vector<1x128xf32> to vector<1x32xf32>
    %442 = arith.negf %441 : vector<1x32xf32>
    %443 = math.exp %442 : vector<1x32xf32>
    %cst_167 = arith.constant 1.000000e+00 : f32
    %444 = vector.broadcast %cst_167 : f32 to vector<1x32xf32>
    %445 = arith.addf %444, %443 : vector<1x32xf32>
    %446 = arith.divf %444, %445 : vector<1x32xf32>
    %447 = vector.extract_strided_slice %440 {offsets = [0, 32], sizes = [1, 32], strides = [1, 1]} : vector<1x128xf32> to vector<1x32xf32>
    %448 = arith.negf %447 : vector<1x32xf32>
    %449 = math.exp %448 : vector<1x32xf32>
    %cst_168 = arith.constant 1.000000e+00 : f32
    %450 = vector.broadcast %cst_168 : f32 to vector<1x32xf32>
    %451 = arith.addf %450, %449 : vector<1x32xf32>
    %452 = arith.divf %450, %451 : vector<1x32xf32>
    %453 = vector.extract_strided_slice %440 {offsets = [0, 64], sizes = [1, 32], strides = [1, 1]} : vector<1x128xf32> to vector<1x32xf32>
    %454 = math.tanh %453 : vector<1x32xf32>
    %455 = vector.extract_strided_slice %440 {offsets = [0, 96], sizes = [1, 32], strides = [1, 1]} : vector<1x128xf32> to vector<1x32xf32>
    %456 = arith.negf %455 : vector<1x32xf32>
    %457 = math.exp %456 : vector<1x32xf32>
    %cst_169 = arith.constant 1.000000e+00 : f32
    %458 = vector.broadcast %cst_169 : f32 to vector<1x32xf32>
    %459 = arith.addf %458, %457 : vector<1x32xf32>
    %460 = arith.divf %458, %459 : vector<1x32xf32>
    %461 = arith.mulf %452, %435 : vector<1x32xf32>
    %462 = arith.mulf %446, %454 : vector<1x32xf32>
    %463 = arith.addf %461, %462 : vector<1x32xf32>
    %464 = math.tanh %463 : vector<1x32xf32>
    %465 = arith.mulf %460, %464 : vector<1x32xf32>
    %466 = vector.extract_strided_slice %295 {offsets = [6, 0], sizes = [1, 128], strides = [1, 1]} : vector<8x128xf32> to vector<1x128xf32>
    %cst_170 = arith.constant dense<0.000000e+00> : vector<1x128xf32>
    %467 = tpu.matmul %465, %291, %cst_170 {dimension_numbers = #tpu.dot_dimension_numbers<[1], [0], [0], [1], [0, 0, 1, 1], [], []>} : vector<1x32xf32>, vector<32x128xf32>, vector<1x128xf32> -> vector<1x128xf32>
    %468 = arith.addf %466, %467 : vector<1x128xf32>
    %469 = vector.extract_strided_slice %468 {offsets = [0, 0], sizes = [1, 32], strides = [1, 1]} : vector<1x128xf32> to vector<1x32xf32>
    %470 = arith.negf %469 : vector<1x32xf32>
    %471 = math.exp %470 : vector<1x32xf32>
    %cst_171 = arith.constant 1.000000e+00 : f32
    %472 = vector.broadcast %cst_171 : f32 to vector<1x32xf32>
    %473 = arith.addf %472, %471 : vector<1x32xf32>
    %474 = arith.divf %472, %473 : vector<1x32xf32>
    %475 = vector.extract_strided_slice %468 {offsets = [0, 32], sizes = [1, 32], strides = [1, 1]} : vector<1x128xf32> to vector<1x32xf32>
    %476 = arith.negf %475 : vector<1x32xf32>
    %477 = math.exp %476 : vector<1x32xf32>
    %cst_172 = arith.constant 1.000000e+00 : f32
    %478 = vector.broadcast %cst_172 : f32 to vector<1x32xf32>
    %479 = arith.addf %478, %477 : vector<1x32xf32>
    %480 = arith.divf %478, %479 : vector<1x32xf32>
    %481 = vector.extract_strided_slice %468 {offsets = [0, 64], sizes = [1, 32], strides = [1, 1]} : vector<1x128xf32> to vector<1x32xf32>
    %482 = math.tanh %481 : vector<1x32xf32>
    %483 = vector.extract_strided_slice %468 {offsets = [0, 96], sizes = [1, 32], strides = [1, 1]} : vector<1x128xf32> to vector<1x32xf32>
    %484 = arith.negf %483 : vector<1x32xf32>
    %485 = math.exp %484 : vector<1x32xf32>
    %cst_173 = arith.constant 1.000000e+00 : f32
    %486 = vector.broadcast %cst_173 : f32 to vector<1x32xf32>
    %487 = arith.addf %486, %485 : vector<1x32xf32>
    %488 = arith.divf %486, %487 : vector<1x32xf32>
    %489 = arith.mulf %480, %463 : vector<1x32xf32>
    %490 = arith.mulf %474, %482 : vector<1x32xf32>
    %491 = arith.addf %489, %490 : vector<1x32xf32>
    %492 = math.tanh %491 : vector<1x32xf32>
    %493 = arith.mulf %488, %492 : vector<1x32xf32>
    %494 = vector.extract_strided_slice %295 {offsets = [7, 0], sizes = [1, 128], strides = [1, 1]} : vector<8x128xf32> to vector<1x128xf32>
    %cst_174 = arith.constant dense<0.000000e+00> : vector<1x128xf32>
    %495 = tpu.matmul %493, %291, %cst_174 {dimension_numbers = #tpu.dot_dimension_numbers<[1], [0], [0], [1], [0, 0, 1, 1], [], []>} : vector<1x32xf32>, vector<32x128xf32>, vector<1x128xf32> -> vector<1x128xf32>
    %496 = arith.addf %494, %495 : vector<1x128xf32>
    %497 = vector.extract_strided_slice %496 {offsets = [0, 0], sizes = [1, 32], strides = [1, 1]} : vector<1x128xf32> to vector<1x32xf32>
    %498 = arith.negf %497 : vector<1x32xf32>
    %499 = math.exp %498 : vector<1x32xf32>
    %cst_175 = arith.constant 1.000000e+00 : f32
    %500 = vector.broadcast %cst_175 : f32 to vector<1x32xf32>
    %501 = arith.addf %500, %499 : vector<1x32xf32>
    %502 = arith.divf %500, %501 : vector<1x32xf32>
    %503 = vector.extract_strided_slice %496 {offsets = [0, 32], sizes = [1, 32], strides = [1, 1]} : vector<1x128xf32> to vector<1x32xf32>
    %504 = arith.negf %503 : vector<1x32xf32>
    %505 = math.exp %504 : vector<1x32xf32>
    %cst_176 = arith.constant 1.000000e+00 : f32
    %506 = vector.broadcast %cst_176 : f32 to vector<1x32xf32>
    %507 = arith.addf %506, %505 : vector<1x32xf32>
    %508 = arith.divf %506, %507 : vector<1x32xf32>
    %509 = vector.extract_strided_slice %496 {offsets = [0, 64], sizes = [1, 32], strides = [1, 1]} : vector<1x128xf32> to vector<1x32xf32>
    %510 = math.tanh %509 : vector<1x32xf32>
    %511 = vector.extract_strided_slice %496 {offsets = [0, 96], sizes = [1, 32], strides = [1, 1]} : vector<1x128xf32> to vector<1x32xf32>
    %512 = arith.negf %511 : vector<1x32xf32>
    %513 = math.exp %512 : vector<1x32xf32>
    %cst_177 = arith.constant 1.000000e+00 : f32
    %514 = vector.broadcast %cst_177 : f32 to vector<1x32xf32>
    %515 = arith.addf %514, %513 : vector<1x32xf32>
    %516 = arith.divf %514, %515 : vector<1x32xf32>
    %517 = arith.mulf %508, %491 : vector<1x32xf32>
    %518 = arith.mulf %502, %510 : vector<1x32xf32>
    %519 = arith.addf %517, %518 : vector<1x32xf32>
    %520 = math.tanh %519 : vector<1x32xf32>
    %521 = arith.mulf %516, %520 : vector<1x32xf32>
    %522 = tpu.concatenate %325, %353, %381, %409, %437, %465, %493, %521 in 0 : vector<1x32xf32>, vector<1x32xf32>, vector<1x32xf32>, vector<1x32xf32>, vector<1x32xf32>, vector<1x32xf32>, vector<1x32xf32>, vector<1x32xf32> -> vector<8x32xf32>
    %c0_178 = arith.constant 0 : index
    %c0_179 = arith.constant 0 : index
    %c0_180 = arith.constant 0 : index
    %523 = vector.load %arg19[%c0_178, %c0_179, %c0_180] : memref<1x8x32xf32, #tpu.memory_space<vmem>>, vector<1x8x32xf32>
    %524 = vector.shape_cast %523 : vector<1x8x32xf32> to vector<8x32xf32>
    %525 = vector.shape_cast %522 : vector<8x32xf32> to vector<1x8x32xf32>
    tpu.vector_store %arg19[%c0_178, %c0_179, %c0_180], %525 {strides = array<i32>} : memref<1x8x32xf32, #tpu.memory_space<vmem>>, vector<1x8x32xf32>,
    return
  }
  func.func @transform_0(%arg0: i32) -> (i32, i32, i32) {
    %c0_i32 = arith.constant 0 : i32
    %c0_i32_0 = arith.constant 0 : i32
    %c0_i32_1 = arith.constant 0 : i32
    return %arg0, %c0_i32, %c0_i32_0 : i32, i32, i32
  }
  func.func @transform_1(%arg0: i32) -> (i32, i32) {
    %c0_i32 = arith.constant 0 : i32
    %c0_i32_0 = arith.constant 0 : i32
    %c0_i32_1 = arith.constant 0 : i32
    return %c0_i32, %c0_i32_0 : i32, i32
  }
  func.func @transform_2(%arg0: i32) -> (i32, i32) {
    %c0_i32 = arith.constant 0 : i32
    %c0_i32_0 = arith.constant 0 : i32
    %c0_i32_1 = arith.constant 0 : i32
    return %c0_i32, %c0_i32_0 : i32, i32
  }
  func.func @transform_3(%arg0: i32) -> (i32, i32, i32) {
    %c0_i32 = arith.constant 0 : i32
    %c0_i32_0 = arith.constant 0 : i32
    %c0_i32_1 = arith.constant 0 : i32
    %c0_i32_2 = arith.constant 0 : i32
    return %c0_i32, %c0_i32_0, %c0_i32_1 : i32, i32, i32
  }
  func.func @transform_4(%arg0: i32) -> (i32, i32, i32) {
    %c0_i32 = arith.constant 0 : i32
    %c0_i32_0 = arith.constant 0 : i32
    %c0_i32_1 = arith.constant 0 : i32
    %c0_i32_2 = arith.constant 0 : i32
    return %c0_i32, %c0_i32_0, %c0_i32_1 : i32, i32, i32
  }
  func.func @transform_5(%arg0: i32) -> (i32, i32, i32) {
    %c0_i32 = arith.constant 0 : i32
    %c0_i32_0 = arith.constant 0 : i32
    %c0_i32_1 = arith.constant 0 : i32
    %c0_i32_2 = arith.constant 0 : i32
    return %c0_i32, %c0_i32_0, %c0_i32_1 : i32, i32, i32
  }
  func.func @transform_6(%arg0: i32) -> (i32, i32, i32) {
    %c0_i32 = arith.constant 0 : i32
    %c0_i32_0 = arith.constant 0 : i32
    %c0_i32_1 = arith.constant 0 : i32
    %c0_i32_2 = arith.constant 0 : i32
    return %c0_i32, %c0_i32_0, %c0_i32_1 : i32, i32, i32
  }
  func.func @transform_7(%arg0: i32) -> (i32, i32, i32) {
    %c0_i32 = arith.constant 0 : i32
    %c0_i32_0 = arith.constant 0 : i32
    %c0_i32_1 = arith.constant 0 : i32
    %c0_i32_2 = arith.constant 0 : i32
    return %c0_i32, %c0_i32_0, %c0_i32_1 : i32, i32, i32
  }
  func.func @transform_8(%arg0: i32) -> (i32, i32, i32) {
    %c0_i32 = arith.constant 0 : i32
    %c0_i32_0 = arith.constant 0 : i32
    %c0_i32_1 = arith.constant 0 : i32
    %c0_i32_2 = arith.constant 0 : i32
    return %c0_i32, %c0_i32_0, %c0_i32_1 : i32, i32, i32
  }
  func.func @transform_9(%arg0: i32) -> (i32, i32, i32) {
    %c0_i32 = arith.constant 0 : i32
    %c0_i32_0 = arith.constant 0 : i32
    %c0_i32_1 = arith.constant 0 : i32
    %c0_i32_2 = arith.constant 0 : i32
    return %c0_i32, %c0_i32_0, %c0_i32_1 : i32, i32, i32
  }
  func.func @transform_10(%arg0: i32) -> (i32, i32, i32) {
    %c0_i32 = arith.constant 0 : i32
    %c0_i32_0 = arith.constant 0 : i32
    %c0_i32_1 = arith.constant 0 : i32
    %c0_i32_2 = arith.constant 0 : i32
    return %c0_i32, %c0_i32_0, %c0_i32_1 : i32, i32, i32
  }
  func.func @transform_11(%arg0: i32) -> (i32, i32, i32) {
    %c0_i32 = arith.constant 0 : i32
    %c0_i32_0 = arith.constant 0 : i32
    %c0_i32_1 = arith.constant 0 : i32
    %c0_i32_2 = arith.constant 0 : i32
    return %c0_i32, %c0_i32_0, %c0_i32_1 : i32, i32, i32
  }
  func.func @transform_12(%arg0: i32) -> (i32, i32, i32) {
    %c0_i32 = arith.constant 0 : i32
    %c0_i32_0 = arith.constant 0 : i32
    %c0_i32_1 = arith.constant 0 : i32
    %c0_i32_2 = arith.constant 0 : i32
    return %c0_i32, %c0_i32_0, %c0_i32_1 : i32, i32, i32
  }
  func.func @transform_13(%arg0: i32) -> (i32, i32, i32) {
    %c0_i32 = arith.constant 0 : i32
    %c0_i32_0 = arith.constant 0 : i32
    %c0_i32_1 = arith.constant 0 : i32
    %c0_i32_2 = arith.constant 0 : i32
    return %c0_i32, %c0_i32_0, %c0_i32_1 : i32, i32, i32
  }
  func.func @transform_14(%arg0: i32) -> (i32, i32, i32) {
    %c0_i32 = arith.constant 0 : i32
    %c0_i32_0 = arith.constant 0 : i32
    %c0_i32_1 = arith.constant 0 : i32
    %c0_i32_2 = arith.constant 0 : i32
    return %c0_i32, %c0_i32_0, %c0_i32_1 : i32, i32, i32
  }
  func.func @transform_15(%arg0: i32) -> (i32, i32) {
    %c0_i32 = arith.constant 0 : i32
    %c0_i32_0 = arith.constant 0 : i32
    %c0_i32_1 = arith.constant 0 : i32
    return %c0_i32, %c0_i32_0 : i32, i32
  }
  func.func @transform_16(%arg0: i32) -> (i32, i32) {
    %c0_i32 = arith.constant 0 : i32
    %c0_i32_0 = arith.constant 0 : i32
    %c0_i32_1 = arith.constant 0 : i32
    return %c0_i32, %c0_i32_0 : i32, i32
  }
  func.func @transform_17(%arg0: i32) -> (i32, i32) {
    %c0_i32 = arith.constant 0 : i32
    %c0_i32_0 = arith.constant 0 : i32
    %c0_i32_1 = arith.constant 0 : i32
    return %c0_i32, %c0_i32_0 : i32, i32
  }
  func.func @transform_18(%arg0: i32) -> (i32, i32, i32) {
    %c0_i32 = arith.constant 0 : i32
    %c0_i32_0 = arith.constant 0 : i32
    %c0_i32_1 = arith.constant 0 : i32
    return %arg0, %c0_i32, %c0_i32_0 : i32, i32, i32
  }
}

</mosaic_0001>

<bundles_post_ra>
// kernel: bert_lstm_forward.1
= control target key start
LH: loop header
LB: loop body
LE: loop exit
PB: predicated region body
PF: predicated region fallthrough
CT: control target
= control target key end

     0   :  { %s4539_s0 = inlined_call_operand.vmem [shape: f32[2,8,32], index: 0, kind: input, shape index: {}]   ;;  %s4540_s1 = inlined_call_operand.vmem [shape: f32[1,32], index: 1, kind: input, shape index: {}]   ;;  %s4541_s2 = inlined_call_operand.vmem [shape: f32[1,32], index: 2, kind: input, shape index: {}]   ;;  %s4542_s3 = inlined_call_operand.vmem [shape: f32[2,32,96], index: 3, kind: input, shape index: {}]   ;;  %s4543_s4 = inlined_call_operand.vmem [shape: f32[2,1,96], index: 4, kind: input, shape index: {}]   ;;  %s4544_s5 = inlined_call_operand.vmem [shape: f32[2,32,32], index: 5, kind: input, shape index: {}]   ;;  %s4545_s6 = inlined_call_operand.vmem [shape: f32[2,1,32], index: 6, kind: input, shape index: {}]   ;;  %s4546_s7 = inlined_call_operand.vmem [shape: f32[2,1,32], index: 7, kind: input, shape index: {}]   ;;  %s4547_s8 = inlined_call_operand.vmem [shape: f32[2,1,32], index: 8, kind: input, shape index: {}]   ;;  %s4548_s9 = inlined_call_operand.vmem [shape: f32[2,32,64], index: 9, kind: input, shape index: {}]   ;;  %s4549_s10 = inlined_call_operand.vmem [shape: f32[2,1,64], index: 10, kind: input, shape index: {}]   ;;  %s4550_s11 = inlined_call_operand.vmem [shape: f32[2,64,32], index: 11, kind: input, shape index: {}]   ;;  %s4551_s12 = inlined_call_operand.vmem [shape: f32[2,1,32], index: 12, kind: input, shape index: {}]   ;;  %s4552_s13 = inlined_call_operand.vmem [shape: f32[2,1,32], index: 13, kind: input, shape index: {}]   ;;  %s4553_s14 = inlined_call_operand.vmem [shape: f32[2,1,32], index: 14, kind: input, shape index: {}]   ;;  %s4554_s15 = inlined_call_operand.vmem [shape: f32[32,128], index: 15, kind: input, shape index: {}]   ;;  %s4555_s16 = inlined_call_operand.vmem [shape: f32[32,128], index: 16, kind: input, shape index: {}]   ;;  %s4556_s17 = inlined_call_operand.vmem [shape: f32[1,128], index: 17, kind: input, shape index: {}]   ;;  %s4557_s18 = inlined_call_operand.hbm [shape: f32[2,8,32], index: 18, kind: output, shape index: {}]  }
   0x1   :  { %4568 = sst [smem:[#allocation8_spill]] %s4539_s0 }
   0x2   :  { %4569 = sst [smem:[#allocation9_spill]] %s4540_s1 }
   0x3   :  { %4570 = sst [smem:[#allocation10_spill]] %s4541_s2 }
   0x4   :  { %4571 = sst [smem:[#allocation11_spill]] %s4542_s3 }
   0x5   :  { %23 = vsyncpa [#allocation3], 0 }
   0x6   :  { %25 = vsyncpa [#allocation3 + $0x1], 0  ;;  %s4006_s27 = smov 0   ;;  %s4008_s28 = smov 0  }
   0x7   :  { %s4010_s29 = smov 0   ;;  %s4012_s30 = smov 0  }
   0x8 LB: > { %4572 = sst [smem:[#allocation5_spill]] %s3894_s29  ;;  %s4027_s0 = sadd.s32 4294967295, %s3898_s30   ;;  %s3898_s30 = sphi %s4012_s30, %s4587_s30   ;;  %s3894_s29 = sphi %s4010_s29, %s4589_s29   ;;  %s3890_s28 = sphi %s4008_s28, %s4591_s28   ;;  %s3886_s27 = sphi %s4006_s27, %s4590_s27  }
   0x9   : > { %s3134_s19 = sadd.s32 4294967294, %s3898_s30   ;;  %s4031_s1 = sadd.s32 1, %s3898_s30  }
   0xa   : > { %4573 = sst [smem:[#allocation6_spill]] %s4031_s1  ;;  %s421_s20 = sadd.s32 1, %s3894_s29 }
   0xb   : > { %s418_s21 = ssub.s32 %s3898_s30, %s4031_s1  ;;  %p431_p0 = scmp.ne.s32.totalorder %s3894_s29, %s3890_s28 }
   0xc   : > { %p419_p1 = scmp.eq.s32.totalorder %s418_s21, 0  ;;  %p432_p2 = scmp.eq.s32.totalorder %s4027_s0, 1 }
   0xd   : > { %p437_p3 = scmp.ne.s32.totalorder %s3890_s28, %s3886_s27  ;;  %p438_p4 = scmp.eq.s32.totalorder %s3134_s19, 1 }
   0xe   : > { %s4042_s22 = scalar_select %p419_p1, %s3894_s29, %s421_s20  }
   0xf   : > { %p4044_p5 = por %p432_p2, %p431_p0  ;;  %p4048_p6 = por %p438_p4, %p437_p3 }
  0x10   : > { %4574 = sst [smem:[#allocation7_spill]] %s4042_s22  ;;  %p3137_p7 = scmp.ge.s32.totalorder %s3898_s30, 1 }
  0x11   : > { %p514_p8 = scmp.lt.s32.totalorder %s3898_s30, 3 }
  0x13   : > { %p515_p9 = pnand %p3137_p7, %p514_p8 }
  0x14   : > { %p567_p10 = scmp.lt.s32.totalorder (!%p515_p9), %s4027_s0, 1  ;;  %vm574_vm0 = vcmask (!%p515_p9), 261120   ;;  %s4577_s20 = sld [smem:[#allocation8_spill]] (!%p515_p9)  ;;  %v3900_v10 = vmov (!%p515_p9), 0.0|0.0   ;;  %vm3901_vm1 = vmmov (!%p515_p9), 0   ;;  %v3902_v13 = vmov (!%p515_p9), 0.0  }
  0x15   : > { %518 = sbr.rel (%p515_p9) target bundleno = 11517 (0x2cfd), region = 92  ;;  %s4578_s3 = sld [smem:[#allocation11_spill]] (!%p515_p9)  ;;  %3579 = vmatprep.subr.bf16.mxu0 (!%p515_p9), %v3900_v10  ;;  %3344 = vmatprep.mubr.msk.f32.mxu0 (!%p515_p9), %vm3901_vm1, %v3902_v13  ;;  %v3142_v24 = vld [vmem:[%s4543_s4] ss:$0 sm:$0xff] (!%p515_p9)  ;;  %vm690_vm2 = vcmask (!%p515_p9), 130048   ;;  %vm766_vm3 = vcmask (!%p515_p9), 64512  }
  0x16   : > { %3347 = vmatprep.subr.mxu1 (!%p515_p9), %v3902_v13  ;;  %3349 = vmatprep.mubr.msk.f32.mxu1 (!%p515_p9), %vm3901_vm1, %v3902_v13  ;;  %s4579_s22 = sld [smem:[#allocation9_spill]] (!%p515_p9)  ;;  %s4565_s29 = smov (!%p515_p9), 96   ;;  %v1025_v59 = vld [vmem:[%s4544_s5] sm:$0xff] (!%p515_p9)  ;;  %v1026_v60 = vld [vmem:[%s4544_s5 + $0x8] sm:$0xff] (!%p515_p9)  ;;  %v1027_v61 = vld [vmem:[%s4544_s5 + $0x10] sm:$0xff] (!%p515_p9)  ;;  %vm1247_vm4 = vcmask (!%p515_p9), 523264  }
  0x17   : > { %s4567_s1 = smov (!%p515_p9), 80   ;;  %v3586_v62 = vpack.c.bf16 (!%p515_p9), %v1026_v60, %v1025_v59  ;;  %v1028_v63 = vld [vmem:[%s4544_s5 + $0x18] sm:$0xff] (!%p515_p9)  ;;  %s4582_s26 = smov (!%p515_p9), 96   ;;  %vm3042_vm5 = vcmask (!%p515_p9), 1040384   ;;  %vm3044_vm6 = vcmask (!%p515_p9), 1041408   ;;  %vm3046_vm7 = vcmask (!%p515_p9), 1042432  }
  0x18   : > { %s4584_s19 = smov (!%p515_p9), 48   ;;  %vm3048_vm8 = vcmask (!%p515_p9), 1043456   ;;  %vm3050_vm9 = vcmask (!%p515_p9), 1044480   ;;  %vm3052_vm10 = vcmask (!%p515_p9), 1045504   ;;  %vm3054_vm11 = vcmask (!%p515_p9), 1046528  }
  0x1b   : > { %v603_v7 = vld [vmem:[%s4578_s3] sm:$0xff] (!%p515_p9)  ;;  %v604_v8 = vld [vmem:[%s4578_s3 + $0x8] sm:$0xff] (!%p515_p9)  ;;  %v605_v9 = vld [vmem:[%s4578_s3 + $0x10] sm:$0xff] (!%p515_p9) }
  0x1c   : > { %s568_s24 = scalar_select %p567_p10, %s4027_s0, 1  ;;  %v3580_v11 = vpack.c.bf16 %v604_v8, %v603_v7  ;;  %v606_v12 = vld [vmem:[%s4578_s3 + $0x18] sm:$0xff]  ;;  %v3140_v19 = vld [vmem:[%s4579_s22] ss:$0 sm:$0xff] }
  0x1d   : > { %v3583_v14 = vpack.c.bf16 %v606_v12, %v605_v9  ;;  %s4564_s22 = smov 112  }
  0x1e   : > { %s3139_s25 = sshll.u32 %s568_s24, 3  ;;  %3581 = vmatpush3.bf16.msra.mxu0 %v3580_v11  ;;  %s4566_s24 = smov 16  }
  0x1f   : > { %s570_s21 = scalar_lea.vmem %s4577_s20, %s3139_s25  ;;  %3582 = vmatprep.subr.bf16.mxu0 %v3900_v10  ;;  %s4580_s25 = sld [smem:[#allocation10_spill]] }
  0x20   : > { %v571_v0 = vld [vmem:[%s570_s21] sm:$0xff]  ;;  %s4561_s20 = smov 64   ;;  %s4563_s21 = smov 48  }
  0x21   : > { %v575_v1 = vsel %vm574_vm0, %v571_v0, 0.0 }
  0x22   : > { %576 = vadd.xlane.f32.xlu0 %v575_v1  ;;  %3584 = vmatpush3.bf16.msra.mxu0 %v3583_v14 }
  0x23   : > { %3585 = vmatprep.subr.bf16.mxu0 %v3900_v10 }
  0x25   : > { %v3141_v21 = vld [vmem:[%s4580_s25] ss:$0 sm:$0xff] }
  0xaf   : > { %v577_v2 = vpop.xlane.xlu0 %576 }
  0xb0   : > { %v579_v3 = vmul.f32 0.03125, %v577_v2 }
  0xb2   : > { %v580_v4 = vsub.f32 %v571_v0, %v579_v3  ;;  %v3589_v0 = vpack.c.bf16 %v1028_v63, %v1027_v61 }
  0xb4   : > { %v581_v5 = vmul.f32 %v580_v4, %v580_v4 }
  0xb6   : > { %v582_v6 = vsel %vm574_vm0, %v581_v5, 0.0  ;;  %v3150_v5 = vld [vmem:[%s4545_s6] ss:$0 sm:$0xff] }
  0xb7   : > { %583 = vadd.xlane.f32.xlu0 %v582_v6 }
 0x144   : > { %v584_v15 = vpop.xlane.xlu0 %583 }
 0x145   : > { %v585_v16 = vmul.f32 0.03125, %v584_v15 }
 0x147   : > { %v586_v17 = vadd.f32 1e-12, %v585_v16 }
 0x149   : > { %3742 = vrsqrt.f32 %v586_v17 }
 0x153   : > { %v3743_v18 = vpop.eup %3742 }
 0x154   : > { %v588_v20 = vmul.f32 %v3743_v18, %v580_v4  ;;  %v1139_v18 = vld [vmem:[%s4548_s9] sm:$0xff] }
 0x156   : > { %v595_v22 = vmul.f32 %v3140_v19, %v588_v20  ;;  %v1140_v19 = vld [vmem:[%s4548_s9 + $0x8] sm:$0xff] }
 0x157   : > { %v3592_v20 = vpack.c.bf16 %v1140_v19, %v1139_v18  ;;  %v3159_v19 = vld [vmem:[%s4553_s14] ss:$0 sm:$0xff] }
 0x158   : > { %v4087_v23 = vadd.f32 %v3141_v21, %v595_v22  ;;  %v1141_v21 = vld [vmem:[%s4548_s9 + $0x10] sm:$0xff]  ;;  %v1142_v22 = vld [vmem:[%s4548_s9 + $0x18] sm:$0xff] }
 0x15a   : > { %3345 = vmatmul.mubr.msk.f32.vlgmr.msra.gmra.mrb[0].mxu0 %vm574_vm0, %v4087_v23 }
 0x15b   : > { %3375 = vmatprep.mubr.msk.f32.mxu0 %vm3901_vm1, %v3902_v13  ;;  %3587 = vmatpush3.bf16.msra.mxu0 %v3586_v62 }
 0x15c   : > { %3588 = vmatprep.subr.bf16.mxu0 %v3900_v10 }
 0x15f   : > { %3590 = vmatpush3.bf16.msra.mxu0 %v3589_v0 }
 0x160   : > { %3597 = vmatprep.subr.bf16.mxu0 %v3900_v10 }
 0x22d   : > { %v683_v25 = vpop.f32.mrb[0].mxu0 }
 0x22e   : > { %v684_v26 = vadd.f32 %v3142_v24, %v683_v25  ;;  %v3346_v27 = vpop.f32.mrb[1].mxu0 }
 0x230   : > { %778 = vrot.lane.b32.xlu0 %v684_v26, %s4561_s20  ;;  %688 = vrot.lane.b32.xlu1 %v684_v26, %s4565_s29  ;;  %s4585_s20 = smov 64   ;;  %s4586_s29 = smov 16  }
 0x234   : > { %856 = vrot.lane.b32.xlu0 %v684_v26, %s4567_s1  ;;  %s4581_s1 = smov 80  }
 0x2a2   : > { %v689_v28 = vpop.permute.xlu1 %688  ;;  %v779_v29 = vpop.permute.xlu0 %778 }
 0x2a3   : > { %3348 = vmatpush3.xpose.msk.msra.mxu1 %vm690_vm2, %v689_v28  ;;  %v3152_v28 = vld [vmem:[%s4546_s7] ss:$0 sm:$0xff] }
 0x2a4   : > { %3352 = vmatprep.subr.mxu1 %v3902_v13 }
 0x2a6   : > { %3350 = vmatmul.mubr.msk.f32.vlgmr.msra.gmra.mrb[0].mxu1 %vm690_vm2, %v684_v26  ;;  %v857_v39 = vpop.permute.xlu0 %856 }
 0x2a7   : > { %3353 = vmatpush3.msra.mxu1 %v779_v29  ;;  %3354 = vmatprep.mubr.msk.f32.mxu1 %vm3901_vm1, %v3902_v13 }
 0x2a8   : > { %3357 = vmatprep.subr.mxu1 %v3902_v13 }
 0x379   : > { %v761_v30 = vpop.f32.mrb[0].mxu1 }
 0x37a   : > { %v765_v31 = vmul.f32 0.25, %v761_v30  ;;  %v3351_v32 = vpop.f32.mrb[1].mxu1  ;;  %v3153_v30 = vld [vmem:[%s4547_s8] ss:$0 sm:$0xff] }
 0x37c   : > { %v767_v33 = vsel %vm766_vm3, %v765_v31, -inf }
 0x37d   : > { %768 = vmax.xlane.f32.xlu1 %v767_v33  ;;  %v1232_v33 = vld [vmem:[%s4550_s11] sm:$0xff] }
 0x40a   : > { %v769_v34 = vpop.xlane.xlu1 %768 }
 0x40b   : > { %v770_v35 = vsub.f32 %v765_v31, %v769_v34  ;;  %v1233_v34 = vld [vmem:[%s4550_s11 + $0x8] sm:$0xff] }
 0x40d   : > { %v771_v36 = vmul.f32 1.442695, %v770_v35  ;;  %v3598_v35 = vpack.c.bf16 %v1233_v34, %v1232_v33 }
 0x40f   : > { %3744 = vpow2.f32 %v771_v36  ;;  %v1234_v36 = vld [vmem:[%s4550_s11 + $0x10] sm:$0xff] }
 0x419   : > { %v3745_v37 = vpop.eup %3744 }
 0x41a   : > { %v773_v38 = vsel %vm766_vm3, %v3745_v37, 0.0 }
 0x41b   : > { %774 = vadd.xlane.f32.xlu0 %v773_v38 }
 0x431   : > { %854 = vrot.lane.b32.xlu0 %v684_v26, %s4564_s22 }
 0x4a8   : > { %v775_v40 = vpop.xlane.xlu0 %774 }
 0x4a9   : > { %3746 = vrcp.f32 %v775_v40  ;;  %v1237_v40 = vld [vmem:[%s4550_s11 + $0x28] sm:$0xff] }
 0x4ac   : > { %v855_v43 = vpop.permute.xlu0 %854 }
 0x4b3   : > { %v3747_v41 = vpop.eup %3746 }
 0x4b4   : > { %v777_v42 = vmul.f32 %v3747_v41, %v3745_v37  ;;  %v1235_v37 = vld [vmem:[%s4550_s11 + $0x18] sm:$0xff] }
 0x4b5   : > { %v3601_v38 = vpack.c.bf16 %v1235_v37, %v1234_v36 }
 0x4b6   : > { %3355 = vmatmul.mubr.msk.f32.vlgmr.msra.gmra.mrb[2].mxu1 %vm766_vm3, %v777_v42  ;;  %v1238_v42 = vld [vmem:[%s4550_s11 + $0x30] sm:$0xff] }
 0x4b7   : > { %3358 = vmatpush3.xpose.msk.msra.mxu1 %vm690_vm2, %v857_v39  ;;  %3359 = vmatprep.mubr.msk.f32.mxu1 %vm3901_vm1, %v3902_v13  ;;  %v1236_v39 = vld [vmem:[%s4550_s11 + $0x20] sm:$0xff] }
 0x4b8   : > { %3362 = vmatprep.subr.mxu1 %v3902_v13  ;;  %v3604_v41 = vpack.c.bf16 %v1237_v40, %v1236_v39 }
 0x4ba   : > { %3360 = vmatmul.mubr.msk.f32.vlgmr.msra.gmra.mrb[4].mxu1 %vm690_vm2, %v855_v43  ;;  %v1239_v43 = vld [vmem:[%s4550_s11 + $0x38] sm:$0xff] }
 0x4bb   : > { %3364 = vmatprep.mubr.msk.f32.mxu1 %vm3901_vm1, %v3902_v13 }
 0x589   : > { %v850_v44 = vpop.f32.mrb[2].mxu1 }
 0x58a   : > { %v3356_v45 = vpop.f32.mrb[3].mxu1 }
 0x58b   : > { %v3154_v45 = vld [vmem:[%s4549_s10] ss:$0 sm:$0xff] }
 0x58d   : > { %v928_v46 = vpop.f32.mrb[4].mxu1 }
 0x58e   : > { %v932_v47 = vmul.f32 0.25, %v928_v46  ;;  %v3361_v48 = vpop.f32.mrb[5].mxu1 }
 0x590   : > { %v933_v49 = vsel %vm766_vm3, %v932_v47, -inf }
 0x591   : > { %934 = vmax.xlane.f32.xlu1 %v933_v49 }
 0x5a2   : > { %944 = vrot.lane.b32.xlu1 %v684_v26, %s4563_s21 }
 0x61e   : > { %v935_v50 = vpop.xlane.xlu1 %934 }
 0x61f   : > { %v936_v51 = vsub.f32 %v932_v47, %v935_v50 }
 0x621   : > { %v937_v52 = vmul.f32 1.442695, %v936_v51 }
 0x622   : > { %v945_v53 = vpop.permute.xlu1 %944 }
 0x623   : > { %3748 = vpow2.f32 %v937_v52  ;;  %3363 = vmatpush3.msra.mxu1 %v945_v53 }
 0x624   : > { %3591 = vmatprep.subr.bf16.mxu1 %v3900_v10 }
 0x62d   : > { %v3749_v54 = vpop.eup %3748 }
 0x62e   : > { %v939_v55 = vsel %vm766_vm3, %v3749_v54, 0.0 }
 0x62f   : > { %940 = vadd.xlane.f32.xlu0 %v939_v55 }
 0x6bc   : > { %v941_v56 = vpop.xlane.xlu0 %940 }
 0x6bd   : > { %3750 = vrcp.f32 %v941_v56 }
 0x6c7   : > { %v3751_v57 = vpop.eup %3750 }
 0x6c8   : > { %v943_v58 = vmul.f32 %v3751_v57, %v3749_v54 }
 0x6ca   : > { %3365 = vmatmul.mubr.msk.f32.vlgmr.msra.gmra.mrb[6].mxu1 %vm766_vm3, %v943_v58  ;;  %v3156_v58 = vld [vmem:[%s4551_s12] ss:$0 sm:$0xff] }
 0x6cb   : > { %3386 = vmatprep.mubr.msk.f32.mxu1 %vm3901_vm1, %v3902_v13  ;;  %3593 = vmatpush3.bf16.msra.mxu1 %v3592_v20 }
 0x6cc   : > { %3594 = vmatprep.subr.bf16.mxu1 %v3900_v10 }
 0x79d   : > { %v1016_v1 = vpop.f32.mrb[6].mxu1 }
 0x79e   : > { %1021 = vrot.lane.b32.xlu1 %v1016_v1, %s4566_s24  ;;  %v3366_v2 = vpop.f32.mrb[7].mxu1  ;;  %s4583_s24 = smov 112  }
 0x810   : > { %v1022_v3 = vpop.permute.xlu1 %1021 }
 0x811   : > { %v1024_v4 = vsel %vm690_vm2, %v850_v44, %v1022_v3  ;;  %v3607_v44 = vpack.c.bf16 %v1239_v43, %v1238_v42 }
 0x812   : > { %3376 = vmatmul.mubr.msk.f32.vlgmr.msra.gmra.mrb[2].mxu0 %vm574_vm0, %v1024_v4 }
 0x813   : > { %3405 = vmatprep.mubr.msk.f32.mxu0 %vm3901_vm1, %v3902_v13  ;;  %3599 = vmatpush3.bf16.msra.mxu0 %v3598_v35 }
 0x814   : > { %3600 = vmatprep.subr.bf16.mxu0 %v3900_v10 }
 0x817   : > { %3602 = vmatpush3.bf16.msra.mxu0 %v3601_v38 }
 0x818   : > { %3603 = vmatprep.subr.bf16.mxu0 %v3900_v10 }
 0x81b   : > { %3605 = vmatpush3.bf16.msra.mxu0 %v3604_v41 }
 0x81c   : > { %3606 = vmatprep.subr.bf16.mxu0 %v3900_v10 }
 0x81f   : > { %3608 = vmatpush3.bf16.msra.mxu0 %v3607_v44 }
 0x820   : > { %3429 = vmatprep.subr.mxu0 %v3902_v13 }
 0x8e5   : > { %v1105_v6 = vpop.f32.mrb[2].mxu0 }
 0x8e6   : > { %v1106_v7 = vadd.f32 %v3150_v5, %v1105_v6  ;;  %v3377_v8 = vpop.f32.mrb[3].mxu0  ;;  %v3160_v5 = vld [vmem:[%s4578_s3 + $0x20] sm:$0xff]  ;;  %v3161_v6 = vld [vmem:[%s4578_s3 + $0x28] sm:$0xff] }
 0x8e7   : > { %v3162_v8 = vld [vmem:[%s4578_s3 + $0x30] sm:$0xff] }
 0x8e8   : > { %v1109_v9 = vadd.f32 %v1106_v7, %v4087_v23  ;;  %v3595_v23 = vpack.c.bf16 %v1142_v22, %v1141_v21  ;;  %v3610_v7 = vpack.c.bf16 %v3161_v6, %v3160_v5  ;;  %v3165_v22 = vld [vmem:[%s4543_s4 + $0x1] ss:$0 sm:$0xff] }
 0x8ea   : > { %v1112_v11 = vsel %vm574_vm0, %v1109_v9, 0.0  ;;  %3596 = vmatpush3.bf16.msra.mxu1 %v3595_v23 }
 0x8eb   : > { %1113 = vadd.xlane.f32.xlu1 %v1112_v11  ;;  %3609 = vmatprep.subr.bf16.mxu1 %v3900_v10 }
 0x978   : > { %v1114_v12 = vpop.xlane.xlu1 %1113 }
 0x979   : > { %v1115_v14 = vmul.f32 0.03125, %v1114_v12 }
 0x97b   : > { %v1116_v15 = vsub.f32 %v1109_v9, %v1115_v14  ;;  %v3163_v9 = vld [vmem:[%s4578_s3 + $0x38] sm:$0xff]  ;;  %s564_s3 = sand.u32 1, %s3890_s28  }
 0x97c   : > { %v3613_v11 = vpack.c.bf16 %v3163_v9, %v3162_v8 }
 0x97d   : > { %v1117_v16 = vmul.f32 %v1116_v15, %v1116_v15 }
 0x97f   : > { %v1118_v17 = vsel %vm574_vm0, %v1117_v16, 0.0 }
 0x980   : > { %1119 = vadd.xlane.f32.xlu0 %v1118_v17  ;;  %v3158_v17 = vld [vmem:[%s4552_s13] ss:$0 sm:$0xff] }
 0xa0d   : > { %v1120_v24 = vpop.xlane.xlu0 %1119 }
 0xa0e   : > { %v1121_v25 = vmul.f32 0.03125, %v1120_v24 }
 0xa10   : > { %v1122_v26 = vadd.f32 1e-12, %v1121_v25 }
 0xa12   : > { %3752 = vrsqrt.f32 %v1122_v26 }
 0xa1c   : > { %v3753_v27 = vpop.eup %3752 }
 0xa1d   : > { %v1124_v29 = vmul.f32 %v3753_v27, %v1116_v15 }
 0xa1f   : > { %v1131_v31 = vmul.f32 %v3152_v28, %v1124_v29 }
 0xa21   : > { %v1138_v32 = vadd.f32 %v3153_v30, %v1131_v31 }
 0xa23   : > { %3387 = vmatmul.mubr.msk.f32.vlgmr.msra.gmra.mrb[8].mxu1 %vm574_vm0, %v1138_v32 }
 0xa24   : > { %3416 = vmatprep.mubr.msk.f32.mxu1 %vm3901_vm1, %v3902_v13  ;;  %3611 = vmatpush3.bf16.msra.mxu1 %v3610_v7 }
 0xa25   : > { %3612 = vmatprep.subr.bf16.mxu1 %v3900_v10 }
 0xa28   : > { %3614 = vmatpush3.bf16.msra.mxu1 %v3613_v11 }
 0xa29   : > { %3419 = vmatprep.subr.mxu1 %v3902_v13 }
 0xaf6   : > { %v1219_v46 = vpop.f32.mrb[8].mxu1 }
 0xaf7   : > { %v1220_v47 = vadd.f32 %v3154_v45, %v1219_v46  ;;  %v3388_v48 = vpop.f32.mrb[9].mxu1 }
 0xaf9   : > { %v1224_v49 = vmul.f32 0.044715, %v1220_v47  ;;  %v1223_v55 = vmul.f32 0.5, %v1220_v47 }
 0xafb   : > { %v1225_v50 = vmul.f32 %v1224_v49, %v1220_v47 }
 0xafd   : > { %v1226_v51 = vmul.f32 %v1225_v50, %v1220_v47 }
 0xaff   : > { %v1227_v52 = vadd.f32 %v1226_v51, %v1220_v47 }
 0xb01   : > { %v1228_v53 = vmul.f32 0.7978846, %v1227_v52 }
 0xb03   : > { %3754 = vtanh.f32 %v1228_v53 }
 0xb0d   : > { %v3755_v54 = vpop.eup %3754 }
 0xb0e   : > { %v1230_v56 = vadd.f32 1.0, %v3755_v54 }
 0xb10   : > { %v1231_v57 = vmul.f32 %v1230_v56, %v1223_v55  ;;  %v3173_v55 = vld [vmem:[%s4544_s5 + $0x20] sm:$0xff]  ;;  %v3174_v56 = vld [vmem:[%s4544_s5 + $0x28] sm:$0xff] }
 0xb12   : > { %3406 = vmatmul.mubr.msk.f32.vlgmr.msra.gmra.mrb[4].mxu0 %vm1247_vm4, %v1231_v57  ;;  %v3175_v57 = vld [vmem:[%s4544_s5 + $0x30] sm:$0xff] }
 0xb13   : > { %3431 = vmatprep.mubr.msk.f32.mxu0 %vm3901_vm1, %v3902_v13 }
 0xbe5   : > { %v1317_v59 = vpop.f32.mrb[4].mxu0 }
 0xbe6   : > { %v1318_v60 = vadd.f32 %v3156_v58, %v1317_v59  ;;  %v3407_v61 = vpop.f32.mrb[5].mxu0  ;;  %v3616_v58 = vpack.c.bf16 %v3174_v56, %v3173_v55  ;;  %v3176_v59 = vld [vmem:[%s4544_s5 + $0x38] sm:$0xff]  ;;  %v3200_v56 = vld [vmem:[%s4551_s12 + $0x1] ss:$0 sm:$0xff] }
 0xbe8   : > { %v1321_v62 = vadd.f32 %v1318_v60, %v1138_v32  ;;  %v3619_v60 = vpack.c.bf16 %v3176_v59, %v3175_v57 }
 0xbea   : > { %v1324_v63 = vsel %vm574_vm0, %v1321_v62, 0.0 }
 0xbeb   : > { %1325 = vadd.xlane.f32.xlu0 %v1324_v63 }
 0xc78   : > { %v1326_v0 = vpop.xlane.xlu0 %1325 }
 0xc79   : > { %v1327_v1 = vmul.f32 0.03125, %v1326_v0 }
 0xc7b   : > { %v1328_v2 = vsub.f32 %v1321_v62, %v1327_v1 }
 0xc7d   : > { %v1329_v3 = vmul.f32 %v1328_v2, %v1328_v2 }
 0xc7f   : > { %v1330_v4 = vsel %vm574_vm0, %v1329_v3, 0.0  ;;  %v3178_v3 = vld [vmem:[%s4545_s6 + $0x1] ss:$0 sm:$0xff] }
 0xc80   : > { %1331 = vadd.xlane.f32.xlu0 %v1330_v4 }
 0xd0d   : > { %v1332_v12 = vpop.xlane.xlu0 %1331 }
 0xd0e   : > { %v1333_v14 = vmul.f32 0.03125, %v1332_v12 }
 0xd10   : > { %v1334_v15 = vadd.f32 1e-12, %v1333_v14 }
 0xd12   : > { %3756 = vrsqrt.f32 %v1334_v15 }
 0xd1c   : > { %v3757_v16 = vpop.eup %3756 }
 0xd1d   : > { %v1336_v18 = vmul.f32 %v3757_v16, %v1328_v2  ;;  %v3184_v16 = vld [vmem:[%s4548_s9 + $0x20] sm:$0xff] }
 0xd1f   : > { %v1343_v20 = vmul.f32 %v3158_v17, %v1336_v18  ;;  %v3185_v17 = vld [vmem:[%s4548_s9 + $0x28] sm:$0xff] }
 0xd20   : > { %v3622_v18 = vpack.c.bf16 %v3185_v17, %v3184_v16 }
 0xd21   : > { %v4230_v21 = vadd.f32 %v3159_v19, %v1343_v20  ;;  %v3186_v19 = vld [vmem:[%s4548_s9 + $0x30] sm:$0xff]  ;;  %v3187_v20 = vld [vmem:[%s4548_s9 + $0x38] sm:$0xff] }
 0xd23   : > { %3417 = vmatmul.mubr.msk.f32.vlgmr.msra.gmra.mrb[10].mxu1 %vm574_vm0, %v4230_v21 }
 0xd24   : > { %3421 = vmatprep.mubr.msk.f32.mxu1 %vm3901_vm1, %v3902_v13 }
 0xdf6   : > { %v1433_v23 = vpop.f32.mrb[10].mxu1 }
 0xdf7   : > { %v1434_v24 = vadd.f32 %v3165_v22, %v1433_v23  ;;  %v3418_v25 = vpop.f32.mrb[11].mxu1 }
 0xdf9   : > { %1604 = vrot.lane.b32.xlu1 %v1434_v24, %s4581_s1  ;;  %1438 = vrot.lane.b32.xlu0 %v1434_v24, %s4582_s26  ;;  %s3909_s26 = smov 32  }
 0xdfd   : > { %1602 = vrot.lane.b32.xlu0 %v1434_v24, %s4583_s24  ;;  %s3138_s24 = sshll.u32 %s564_s3, 3 }
 0xe6b   : > { %v1605_v26 = vpop.permute.xlu1 %1604  ;;  %v1439_v27 = vpop.permute.xlu0 %1438 }
 0xe6c   : > { %3420 = vmatpush3.xpose.msk.msra.mxu1 %vm690_vm2, %v1439_v27  ;;  %3430 = vmatpush3.xpose.msk.msra.mxu0 %vm690_vm2, %v1605_v26  ;;  %v3182_v26 = vld [vmem:[%s4546_s7 + $0x1] ss:$0 sm:$0xff] }
 0xe6d   : > { %3424 = vmatprep.subr.mxu1 %v3902_v13  ;;  %3615 = vmatprep.subr.bf16.mxu0 %v3900_v10 }
 0xe6f   : > { %3422 = vmatmul.mubr.msk.f32.vlgmr.msra.gmra.mrb[12].mxu1 %vm690_vm2, %v1434_v24  ;;  %v1603_v28 = vpop.permute.xlu0 %1602 }
 0xe70   : > { %3432 = vmatmul.mubr.msk.f32.vlgmr.msra.gmra.mrb[6].mxu0 %vm690_vm2, %v1603_v28  ;;  %3426 = vmatprep.mubr.msk.f32.mxu1 %vm3901_vm1, %v3902_v13  ;;  %v3183_v28 = vld [vmem:[%s4547_s8 + $0x1] ss:$0 sm:$0xff] }
 0xe71   : > { %3447 = vmatprep.mubr.msk.f32.mxu0 %vm3901_vm1, %v3902_v13  ;;  %3617 = vmatpush3.bf16.msra.mxu0 %v3616_v58 }
 0xe72   : > { %3618 = vmatprep.subr.bf16.mxu0 %v3900_v10 }
 0xe75   : > { %3620 = vmatpush3.bf16.msra.mxu0 %v3619_v60 }
 0xe76   : > { %3627 = vmatprep.subr.bf16.mxu0 %v3900_v10 }
 0xf42   : > { %v1510_v29 = vpop.f32.mrb[12].mxu1 }
 0xf43   : > { %v1514_v30 = vmul.f32 0.25, %v1510_v29  ;;  %v3423_v31 = vpop.f32.mrb[13].mxu1  ;;  %v1676_v32 = vpop.f32.mrb[6].mxu0 }
 0xf44   : > { %v1680_v33 = vmul.f32 0.25, %v1676_v32  ;;  %v3433_v34 = vpop.f32.mrb[7].mxu0  ;;  %v3191_v31 = vld [vmem:[%s4550_s11 + $0x40] sm:$0xff]  ;;  %v3192_v32 = vld [vmem:[%s4550_s11 + $0x48] sm:$0xff] }
 0xf45   : > { %v1515_v35 = vsel %vm766_vm3, %v1514_v30, -inf  ;;  %v3193_v34 = vld [vmem:[%s4550_s11 + $0x50] sm:$0xff] }
 0xf46   : > { %1516 = vmax.xlane.f32.xlu0 %v1515_v35  ;;  %v1681_v36 = vsel %vm766_vm3, %v1680_v33, -inf  ;;  %v3194_v35 = vld [vmem:[%s4550_s11 + $0x58] sm:$0xff] }
 0xf47   : > { %1682 = vmax.xlane.f32.xlu1 %v1681_v36  ;;  %v3631_v36 = vpack.c.bf16 %v3194_v35, %v3193_v34 }
 0xf58   : > { %1692 = vrot.lane.b32.xlu1 %v1434_v24, %s4584_s19  ;;  %s3224_s19 = sshll.u32 %s4027_s0, 7  ;;  %s3910_s0 = smov [#allocation2]  }
 0xf59   : > { %s4496_s1 = scalar_lea.hbm %s4557_s18, %s3224_s19 }
 0xfd3   : > { %v1517_v37 = vpop.xlane.xlu0 %1516 }
 0xfd4   : > { %v1518_v38 = vsub.f32 %v1514_v30, %v1517_v37  ;;  %v1683_v39 = vpop.xlane.xlu1 %1682  ;;  %v3195_v37 = vld [vmem:[%s4550_s11 + $0x60] sm:$0xff] }
 0xfd5   : > { %v1684_v40 = vsub.f32 %v1680_v33, %v1683_v39  ;;  %v3628_v33 = vpack.c.bf16 %v3192_v32, %v3191_v31 }
 0xfd6   : > { %v1519_v41 = vmul.f32 1.442695, %v1518_v38  ;;  %v3196_v38 = vld [vmem:[%s4550_s11 + $0x68] sm:$0xff] }
 0xfd7   : > { %v1685_v42 = vmul.f32 1.442695, %v1684_v40  ;;  %v3634_v39 = vpack.c.bf16 %v3196_v38, %v3195_v37  ;;  %v3197_v40 = vld [vmem:[%s4550_s11 + $0x70] sm:$0xff] }
 0xfd8   : > { %3758 = vpow2.f32 %v1519_v41  ;;  %v1693_v52 = vpop.permute.xlu1 %1692  ;;  %v3198_v41 = vld [vmem:[%s4550_s11 + $0x78] sm:$0xff] }
 0xfd9   : > { %3760 = vpow2.f32 %v1685_v42  ;;  %v3637_v42 = vpack.c.bf16 %v3198_v41, %v3197_v40 }
 0xfe2   : > { %v3759_v43 = vpop.eup %3758 }
 0xfe3   : > { %v1521_v44 = vsel %vm766_vm3, %v3759_v43, 0.0  ;;  %v3761_v45 = vpop.eup %3760 }
 0xfe4   : > { %1522 = vadd.xlane.f32.xlu0 %v1521_v44  ;;  %v1687_v46 = vsel %vm766_vm3, %v3761_v45, 0.0 }
 0xfe8   : > { %1688 = vadd.xlane.f32.xlu0 %v1687_v46 }
 0xffe   : > { %1526 = vrot.lane.b32.xlu0 %v1434_v24, %s4585_s20 }
0x1071   : > { %v1523_v47 = vpop.xlane.xlu0 %1522 }
0x1072   : > { %3762 = vrcp.f32 %v1523_v47 }
0x1075   : > { %v1689_v48 = vpop.xlane.xlu0 %1688 }
0x1076   : > { %3764 = vrcp.f32 %v1689_v48 }
0x1079   : > { %v1527_v49 = vpop.permute.xlu0 %1526 }
0x107a   : > { %3425 = vmatpush3.msra.mxu1 %v1527_v49 }
0x107b   : > { %3434 = vmatprep.subr.mxu1 %v3902_v13 }
0x107c   : > { %v3763_v50 = vpop.eup %3762 }
0x107d   : > { %v1525_v51 = vmul.f32 %v3763_v50, %v3759_v43  ;;  %v3189_v43 = vld [vmem:[%s4549_s10 + $0x1] ss:$0 sm:$0xff] }
0x107f   : > { %3427 = vmatmul.mubr.msk.f32.vlgmr.msra.gmra.mrb[14].mxu1 %vm766_vm3, %v1525_v51 }
0x1080   : > { %v3765_v53 = vpop.eup %3764  ;;  %3435 = vmatpush3.msra.mxu1 %v1693_v52  ;;  %3436 = vmatprep.mubr.msk.f32.mxu1 %vm3901_vm1, %v3902_v13 }
0x1081   : > { %v1691_v54 = vmul.f32 %v3765_v53, %v3761_v45  ;;  %3621 = vmatprep.subr.bf16.mxu1 %v3900_v10 }
0x1083   : > { %3437 = vmatmul.mubr.msk.f32.vlgmr.msra.gmra.mrb[16].mxu1 %vm766_vm3, %v1691_v54 }
0x1084   : > { %3458 = vmatprep.mubr.msk.f32.mxu1 %vm3901_vm1, %v3902_v13  ;;  %3623 = vmatpush3.bf16.msra.mxu1 %v3622_v18 }
0x1085   : > { %3624 = vmatprep.subr.bf16.mxu1 %v3900_v10 }
0x1152   : > { %v1598_v61 = vpop.f32.mrb[14].mxu1 }
0x1153   : > { %v3428_v62 = vpop.f32.mrb[15].mxu1 }
0x1156   : > { %v1764_v63 = vpop.f32.mrb[16].mxu1 }
0x1157   : > { %1769 = vrot.lane.b32.xlu1 %v1764_v63, %s4586_s29  ;;  %v3438_v0 = vpop.f32.mrb[17].mxu1  ;;  %s566_s29 = scalar_lea.vmem [#allocation2], %s3138_s24  ;;  %s3840_s24 = sshll.u32 %s3910_s0, 4  ;;  %s3841_s24 = int_to_ptr.vmem [resolvable:$false] %s3840_s24 }
0x1158   : > { %s3075_s22 = sshll.u32 %s566_s29, 4  ;;  %s3842_s21 = scalar_lea.vmem %s3841_s24, 256  ;;  %s4498_s22 = int_to_ptr.vmem [resolvable:$true] %s3075_s22 }
0x1159   : > { %p3843_p0 = scmp.lt.s32.totalorder %s4498_s22, %s3841_s24 }
0x11c9   : > { %v1770_v1 = vpop.permute.xlu1 %1769 }
0x11ca   : > { %v1772_v2 = vsel %vm690_vm2, %v1598_v61, %v1770_v1 }
0x11cb   : > { %3448 = vmatmul.mubr.msk.f32.vlgmr.msra.gmra.mrb[8].mxu0 %vm574_vm0, %v1772_v2 }
0x11cc   : > { %3477 = vmatprep.mubr.msk.f32.mxu0 %vm3901_vm1, %v3902_v13  ;;  %3629 = vmatpush3.bf16.msra.mxu0 %v3628_v33 }
0x11cd   : > { %3630 = vmatprep.subr.bf16.mxu0 %v3900_v10 }
0x11d0   : > { %3632 = vmatpush3.bf16.msra.mxu0 %v3631_v36 }
0x11d1   : > { %3633 = vmatprep.subr.bf16.mxu0 %v3900_v10 }
0x11d4   : > { %3635 = vmatpush3.bf16.msra.mxu0 %v3634_v39 }
0x11d5   : > { %3636 = vmatprep.subr.bf16.mxu0 %v3900_v10 }
0x11d8   : > { %3638 = vmatpush3.bf16.msra.mxu0 %v3637_v42 }
0x11d9   : > { %3651 = vmatprep.subr.bf16.mxu0 %v3900_v10 }
0x129e   : > { %v1855_v4 = vpop.f32.mrb[8].mxu0 }
0x129f   : > { %v1856_v5 = vadd.f32 %v3178_v3, %v1855_v4  ;;  %v3449_v6 = vpop.f32.mrb[9].mxu0  ;;  %v2108_v3 = vld [vmem:[%s4554_s15] sm:$0xff]  ;;  %v2109_v4 = vld [vmem:[%s4554_s15 + $0x8] sm:$0xff] }
0x12a0   : > { %v2110_v6 = vld [vmem:[%s4554_s15 + $0x10] sm:$0xff] }
0x12a1   : > { %v1859_v7 = vadd.f32 %v1856_v5, %v4230_v21  ;;  %v3625_v21 = vpack.c.bf16 %v3187_v20, %v3186_v19  ;;  %v3640_v5 = vpack.c.bf16 %v2109_v4, %v2108_v3 }
0x12a3   : > { %v1864_v8 = vsel %vm574_vm0, %v1859_v7, 0.0  ;;  %3626 = vmatpush3.bf16.msra.mxu1 %v3625_v21  ;;  %v3204_v21 = vld [vmem:[%s4552_s13 + $0x1] ss:$0 sm:$0xff] }
0x12a4   : > { %1865 = vadd.xlane.f32.xlu0 %v1864_v8  ;;  %3639 = vmatprep.subr.bf16.mxu1 %v3900_v10 }
0x1331   : > { %v1866_v9 = vpop.xlane.xlu0 %1865 }
0x1332   : > { %v1867_v11 = vmul.f32 0.03125, %v1866_v9  ;;  %v2112_v9 = vld [vmem:[%s4555_s16] sm:$0xff] }
0x1334   : > { %v1868_v12 = vsub.f32 %v1859_v7, %v1867_v11  ;;  %v2111_v7 = vld [vmem:[%s4554_s15 + $0x18] sm:$0xff]  ;;  %v2113_v11 = vld [vmem:[%s4555_s16 + $0x8] sm:$0xff] }
0x1335   : > { %v3643_v8 = vpack.c.bf16 %v2111_v7, %v2110_v6 }
0x1336   : > { %v1869_v14 = vmul.f32 %v1868_v12, %v1868_v12 }
0x1338   : > { %v1870_v15 = vsel %vm574_vm0, %v1869_v14, 0.0  ;;  %v2114_v14 = vld [vmem:[%s4555_s16 + $0x10] sm:$0xff] }
0x1339   : > { %1871 = vadd.xlane.f32.xlu1 %v1870_v15  ;;  %v2115_v15 = vld [vmem:[%s4555_s16 + $0x18] sm:$0xff] }
0x133a   : > { %v4383_v16 = vpack.c.bf16 %v2115_v15, %v2114_v14 }
0x13c6   : > { %v1872_v22 = vpop.xlane.xlu1 %1871 }
0x13c7   : > { %v1873_v23 = vmul.f32 0.03125, %v1872_v22 }
0x13c9   : > { %v1874_v24 = vadd.f32 1e-12, %v1873_v23  ;;  %v3205_v23 = vld [vmem:[%s4553_s14 + $0x1] ss:$0 sm:$0xff] }
0x13cb   : > { %3766 = vrsqrt.f32 %v1874_v24 }
0x13d5   : > { %v3767_v25 = vpop.eup %3766 }
0x13d6   : > { %v1876_v27 = vmul.f32 %v3767_v25, %v1868_v12  ;;  %v4373_v12 = vpack.c.bf16 %v2113_v11, %v2112_v9 }
0x13d8   : > { %v1883_v29 = vmul.f32 %v3182_v26, %v1876_v27 }
0x13da   : > { %v1890_v30 = vadd.f32 %v3183_v28, %v1883_v29  ;;  %v3206_v28 = vld [vmem:[%s4556_s17] ss:$0 sm:$0xff] }
0x13dc   : > { %3459 = vmatmul.mubr.msk.f32.vlgmr.msra.gmra.mrb[18].mxu1 %vm574_vm0, %v1890_v30 }
0x13dd   : > { %3488 = vmatprep.mubr.msk.f32.mxu1 %vm3901_vm1, %v3902_v13  ;;  %3641 = vmatpush3.bf16.msra.mxu1 %v3640_v5 }
0x13de   : > { %3642 = vmatprep.subr.bf16.mxu1 %v3900_v10 }
0x13e1   : > { %3644 = vmatpush3.bf16.msra.mxu1 %v3643_v8 }
0x13e2   : > { %3645 = vmatprep.subr.bf16.mxu1 %v3900_v10 }
0x14af   : > { %v1973_v44 = vpop.f32.mrb[18].mxu1 }
0x14b0   : > { %v1974_v45 = vadd.f32 %v3189_v43, %v1973_v44  ;;  %v3460_v46 = vpop.f32.mrb[19].mxu1 }
0x14b2   : > { %v1978_v47 = vmul.f32 0.044715, %v1974_v45  ;;  %v1977_v53 = vmul.f32 0.5, %v1974_v45 }
0x14b4   : > { %v1979_v48 = vmul.f32 %v1978_v47, %v1974_v45 }
0x14b6   : > { %v1980_v49 = vmul.f32 %v1979_v48, %v1974_v45 }
0x14b8   : > { %v1981_v50 = vadd.f32 %v1980_v49, %v1974_v45 }
0x14ba   : > { %v1982_v51 = vmul.f32 0.7978846, %v1981_v50 }
0x14bc   : > { %3768 = vtanh.f32 %v1982_v51 }
0x14c6   : > { %v3769_v52 = vpop.eup %3768 }
0x14c7   : > { %v1984_v54 = vadd.f32 1.0, %v3769_v52 }
0x14c9   : > { %v1985_v55 = vmul.f32 %v1984_v54, %v1977_v53 }
0x14cb   : > { %3478 = vmatmul.mubr.msk.f32.vlgmr.msra.gmra.mrb[10].mxu0 %vm1247_vm4, %v1985_v55 }
0x14cc   : > { %3510 = vmatprep.mubr.msk.f32.mxu0 %vm3901_vm1, %v3902_v13  ;;  %3653 = vmatpush3.bf16.msra.mxu0 %v4373_v12 }
0x14cd   : > { %3654 = vmatprep.subr.bf16.mxu0 %v3900_v10 }
0x14d0   : > { %3656 = vmatpush3.bf16.msra.mxu0 %v4383_v16 }
0x14d1   : > { %3663 = vmatprep.subr.bf16.mxu0 %v3900_v10 }
0x159e   : > { %v2072_v57 = vpop.f32.mrb[10].mxu0 }
0x159f   : > { %v2073_v58 = vadd.f32 %v3200_v56, %v2072_v57  ;;  %v3479_v59 = vpop.f32.mrb[11].mxu0 }
0x15a1   : > { %v2076_v60 = vadd.f32 %v2073_v58, %v1890_v30 }
0x15a3   : > { %v2081_v61 = vsel %vm574_vm0, %v2076_v60, 0.0 }
0x15a4   : > { %2082 = vadd.xlane.f32.xlu0 %v2081_v61 }
0x1631   : > { %v2083_v62 = vpop.xlane.xlu0 %2082 }
0x1632   : > { %v2084_v63 = vmul.f32 0.03125, %v2083_v62 }
0x1634   : > { %v2085_v0 = vsub.f32 %v2076_v60, %v2084_v63 }
0x1636   : > { %v2086_v1 = vmul.f32 %v2085_v0, %v2085_v0 }
0x1638   : > { %v2087_v2 = vsel %vm574_vm0, %v2086_v1, 0.0 }
0x1639   : > { %2088 = vadd.xlane.f32.xlu0 %v2087_v2 }
0x16c6   : > { %v2089_v17 = vpop.xlane.xlu0 %2088 }
0x16c7   : > { %v2090_v18 = vmul.f32 0.03125, %v2089_v17 }
0x16c9   : > { %v2091_v19 = vadd.f32 1e-12, %v2090_v18 }
0x16cb   : > { %3770 = vrsqrt.f32 %v2091_v19 }
0x16d5   : > { %v3771_v20 = vpop.eup %3770 }
0x16d6   : > { %v2093_v22 = vmul.f32 %v3771_v20, %v2085_v0 }
0x16d8   : > { %v2100_v24 = vmul.f32 %v3204_v21, %v2093_v22 }
0x16da   : > { %v2107_v25 = vadd.f32 %v3205_v23, %v2100_v24 }
0x16dc   : > { %3489 = vmatmul.mubr.msk.f32.vlgmr.msra.gmra.mrb[20].mxu1 %vm574_vm0, %v2107_v25 }
0x16dd   : > { %3647 = vmatpush3.bf16.msra.mxu1 %v4373_v12  ;;  %3499 = vmatprep.mubr.msk.f32.mxu1 %vm3901_vm1, %v3902_v13 }
0x16de   : > { %3648 = vmatprep.subr.bf16.mxu1 %v3900_v10 }
0x16e1   : > { %3650 = vmatpush3.bf16.msra.mxu1 %v4383_v16 }
0x16e2   : > { %3657 = vmatprep.subr.bf16.mxu1 %v3900_v10 }
0x16e4   : > { %3500 = vmatmul.mubr.f32.vlgmr.msra.gmra.mrb[22].mxu1 %v3902_v13 }
0x16e5   : > { %3659 = vmatpush3.bf16.msra.mxu1 %v4373_v12  ;;  %3521 = vmatprep.mubr.msk.f32.mxu1 %vm3901_vm1, %v3902_v13 }
0x16e6   : > { %3660 = vmatprep.subr.bf16.mxu1 %v3900_v10 }
0x16e9   : > { %3662 = vmatpush3.bf16.msra.mxu1 %v4383_v16 }
0x16ea   : > { %3669 = vmatprep.subr.bf16.mxu1 %v3900_v10 }
0x17af   : > { %v2192_v26 = vpop.f32.mrb[20].mxu1 }
0x17b0   : > { %v3490_v27 = vpop.f32.mrb[21].mxu1  ;;  %v4410_v29 = vadd.f32 %v3206_v28, %v2192_v26 }
0x17b7   : > { %v2265_v30 = vpop.f32.mrb[22].mxu1 }
0x17b8   : > { %v2269_v31 = vadd.f32 %v2265_v30, %v4410_v29  ;;  %v3501_v32 = vpop.f32.mrb[23].mxu1 }
0x17ba   : > { %3772 = vtanh.f32 %v2269_v31  ;;  %v3208_v34 = vmul.f32 -1.442695, %v2269_v31 }
0x17bc   : > { %3774 = vpow2.f32 %v3208_v34 }
0x17c4   : > { %v3773_v33 = vpop.eup %3772 }
0x17c5   : > { %2279 = vrot.lane.b32.xlu0 %v3773_v33, %s4585_s20 }
0x17c6   : > { %v3775_v35 = vpop.eup %3774 }
0x17c7   : > { %v2273_v36 = vadd.f32 1.0, %v3775_v35 }
0x17c9   : > { %3776 = vrcp.f32 %v2273_v36 }
0x17d3   : > { %v3777_v37 = vpop.eup %3776 }
0x17d4   : > { %v2277_v40 = vmul.f32 0.0, %v3777_v37 }
0x1837   : > { %v2280_v38 = vpop.permute.xlu0 %2279 }
0x1838   : > { %v2282_v39 = vmul.f32 %v3777_v37, %v2280_v38 }
0x183a   : > { %2284 = vrot.lane.b32.xlu1 %v2282_v39, %s3909_s26 }
0x18ac   : > { %v2285_v41 = vpop.permute.xlu1 %2284 }
0x18ad   : > { %v2287_v42 = vadd.f32 %v2285_v41, %v2277_v40 }
0x18af   : > { %3778 = vtanh.f32 %v2287_v42  ;;  %v2381_v58 = vrot.slane %v2287_v42, 7 }
0x18b9   : > { %v3779_v43 = vpop.eup %3778 }
0x18ba   : > { %2290 = vrot.lane.b32.xlu1 %v3779_v43, %s4585_s20 }
0x192c   : > { %v2291_v44 = vpop.permute.xlu1 %2290 }
0x192d   : > { %v4416_v45 = vmul.f32 %v3777_v37, %v2291_v44 }
0x192f   : > { %2295 = vrot.lane.b32.xlu1 %v4416_v45, %s3909_s26 }
0x19a1   : > { %v2296_v46 = vpop.permute.xlu1 %2295 }
0x19a2   : > { %3511 = vmatmul.mubr.msk.f32.vlgmr.msra.gmra.mrb[12].mxu0 %vm574_vm0, %v2296_v46 }
0x19a3   : > { %3665 = vmatpush3.bf16.msra.mxu0 %v4373_v12  ;;  %3532 = vmatprep.mubr.msk.f32.mxu0 %vm3901_vm1, %v3902_v13 }
0x19a4   : > { %3666 = vmatprep.subr.bf16.mxu0 %v3900_v10 }
0x19a7   : > { %3668 = vmatpush3.bf16.msra.mxu0 %v4383_v16 }
0x19a8   : > { %3675 = vmatprep.subr.bf16.mxu0 %v3900_v10 }
0x1a75   : > { %v2365_v47 = vpop.f32.mrb[12].mxu0 }
0x1a76   : > { %v2370_v48 = vrot.slane %v2365_v47, 7  ;;  %v3512_v49 = vpop.f32.mrb[13].mxu0 }
0x1a78   : > { %v2372_v50 = vadd.f32 %v2370_v48, %v4410_v29 }
0x1a7a   : > { %3780 = vtanh.f32 %v2372_v50  ;;  %v3210_v52 = vmul.f32 -1.442695, %v2372_v50 }
0x1a7c   : > { %3782 = vpow2.f32 %v3210_v52 }
0x1a84   : > { %v3781_v51 = vpop.eup %3780 }
0x1a85   : > { %2385 = vrot.lane.b32.xlu0 %v3781_v51, %s4585_s20 }
0x1a86   : > { %v3783_v53 = vpop.eup %3782 }
0x1a87   : > { %v2376_v54 = vadd.f32 1.0, %v3783_v53 }
0x1a89   : > { %3784 = vrcp.f32 %v2376_v54 }
0x1a93   : > { %v3785_v55 = vpop.eup %3784 }
0x1a94   : > { %v2383_v59 = vmul.f32 %v3785_v55, %v2381_v58 }
0x1af7   : > { %v2386_v56 = vpop.permute.xlu0 %2385 }
0x1af8   : > { %v2388_v57 = vmul.f32 %v3785_v55, %v2386_v56 }
0x1afa   : > { %2390 = vrot.lane.b32.xlu1 %v2388_v57, %s3909_s26 }
0x1b6c   : > { %v2391_v60 = vpop.permute.xlu1 %2390 }
0x1b6d   : > { %v2393_v61 = vadd.f32 %v2391_v60, %v2383_v59 }
0x1b6f   : > { %3786 = vtanh.f32 %v2393_v61  ;;  %v2488_v18 = vrot.slane %v2393_v61, 7 }
0x1b79   : > { %v3787_v62 = vpop.eup %3786 }
0x1b7a   : > { %2396 = vrot.lane.b32.xlu0 %v3787_v62, %s4585_s20 }
0x1bec   : > { %v2397_v63 = vpop.permute.xlu0 %2396 }
0x1bed   : > { %v2399_v0 = vmul.f32 %v3785_v55, %v2397_v63 }
0x1bef   : > { %v2401_v1 = vrot.slane %v2399_v0, 1  ;;  %v3043_v25 = vsel %vm3042_vm5, %v4416_v45, %v2399_v0 }
0x1bf1   : > { %2402 = vrot.lane.b32.xlu1 %v2401_v1, %s3909_s26 }
0x1c63   : > { %v2403_v2 = vpop.permute.xlu1 %2402 }
0x1c64   : > { %3522 = vmatmul.mubr.msk.f32.vlgmr.msra.gmra.mrb[24].mxu1 %vm574_vm0, %v2403_v2 }
0x1c65   : > { %3671 = vmatpush3.bf16.msra.mxu1 %v4373_v12  ;;  %3543 = vmatprep.mubr.msk.f32.mxu1 %vm3901_vm1, %v3902_v13 }
0x1c66   : > { %3672 = vmatprep.subr.bf16.mxu1 %v3900_v10 }
0x1c69   : > { %3674 = vmatpush3.bf16.msra.mxu1 %v4383_v16 }
0x1c6a   : > { %3681 = vmatprep.subr.bf16.mxu1 %v3900_v10 }
0x1d37   : > { %v2472_v3 = vpop.f32.mrb[24].mxu1 }
0x1d38   : > { %v2477_v4 = vrot.slane %v2472_v3, 6  ;;  %v3523_v5 = vpop.f32.mrb[25].mxu1 }
0x1d3a   : > { %v2479_v6 = vadd.f32 %v2477_v4, %v4410_v29 }
0x1d3c   : > { %3788 = vtanh.f32 %v2479_v6  ;;  %v3212_v8 = vmul.f32 -1.442695, %v2479_v6 }
0x1d3e   : > { %3790 = vpow2.f32 %v3212_v8 }
0x1d46   : > { %v3789_v7 = vpop.eup %3788 }
0x1d47   : > { %2492 = vrot.lane.b32.xlu0 %v3789_v7, %s4585_s20 }
0x1d48   : > { %v3791_v9 = vpop.eup %3790 }
0x1d49   : > { %v2483_v11 = vadd.f32 1.0, %v3791_v9 }
0x1d4b   : > { %3792 = vrcp.f32 %v2483_v11 }
0x1d55   : > { %v3793_v14 = vpop.eup %3792 }
0x1d56   : > { %v2490_v19 = vmul.f32 %v3793_v14, %v2488_v18 }
0x1db9   : > { %v2493_v15 = vpop.permute.xlu0 %2492 }
0x1dba   : > { %v2495_v17 = vmul.f32 %v3793_v14, %v2493_v15 }
0x1dbc   : > { %2497 = vrot.lane.b32.xlu1 %v2495_v17, %s3909_s26 }
0x1e2e   : > { %v2498_v20 = vpop.permute.xlu1 %2497 }
0x1e2f   : > { %v2500_v21 = vadd.f32 %v2498_v20, %v2490_v19 }
0x1e31   : > { %3794 = vtanh.f32 %v2500_v21  ;;  %v2595_v41 = vrot.slane %v2500_v21, 7 }
0x1e3b   : > { %v3795_v22 = vpop.eup %3794 }
0x1e3c   : > { %2503 = vrot.lane.b32.xlu0 %v3795_v22, %s4585_s20 }
0x1eae   : > { %v2504_v23 = vpop.permute.xlu0 %2503 }
0x1eaf   : > { %v2506_v24 = vmul.f32 %v3793_v14, %v2504_v23 }
0x1eb1   : > { %v2508_v26 = vrot.slane %v2506_v24, 2  ;;  %v3045_v27 = vsel %vm3044_vm6, %v3043_v25, %v2506_v24 }
0x1eb3   : > { %2509 = vrot.lane.b32.xlu1 %v2508_v26, %s3909_s26 }
0x1f25   : > { %v2510_v28 = vpop.permute.xlu1 %2509 }
0x1f26   : > { %3533 = vmatmul.mubr.msk.f32.vlgmr.msra.gmra.mrb[14].mxu0 %vm574_vm0, %v2510_v28 }
0x1f27   : > { %3677 = vmatpush3.bf16.msra.mxu0 %v4373_v12  ;;  %3554 = vmatprep.mubr.msk.f32.mxu0 %vm3901_vm1, %v3902_v13 }
0x1f28   : > { %3678 = vmatprep.subr.bf16.mxu0 %v3900_v10 }
0x1f2b   : > { %3680 = vmatpush3.bf16.msra.mxu0 %v4383_v16 }
0x1f2c   : > { %3687 = vmatprep.subr.bf16.mxu0 %v3900_v10 }
0x1ff9   : > { %v2579_v30 = vpop.f32.mrb[14].mxu0 }
0x1ffa   : > { %v2584_v31 = vrot.slane %v2579_v30, 5  ;;  %v3534_v32 = vpop.f32.mrb[15].mxu0 }
0x1ffc   : > { %v2586_v33 = vadd.f32 %v2584_v31, %v4410_v29 }
0x1ffe   : > { %3796 = vtanh.f32 %v2586_v33  ;;  %v3214_v35 = vmul.f32 -1.442695, %v2586_v33 }
0x2000   : > { %3798 = vpow2.f32 %v3214_v35 }
0x2008   : > { %v3797_v34 = vpop.eup %3796 }
0x2009   : > { %2599 = vrot.lane.b32.xlu0 %v3797_v34, %s4585_s20 }
0x200a   : > { %v3799_v36 = vpop.eup %3798 }
0x200b   : > { %v2590_v37 = vadd.f32 1.0, %v3799_v36 }
0x200d   : > { %3800 = vrcp.f32 %v2590_v37 }
0x2017   : > { %v3801_v38 = vpop.eup %3800 }
0x2018   : > { %v2597_v42 = vmul.f32 %v3801_v38, %v2595_v41 }
0x207b   : > { %v2600_v39 = vpop.permute.xlu0 %2599 }
0x207c   : > { %v2602_v40 = vmul.f32 %v3801_v38, %v2600_v39 }
0x207e   : > { %2604 = vrot.lane.b32.xlu1 %v2602_v40, %s3909_s26 }
0x20f0   : > { %v2605_v43 = vpop.permute.xlu1 %2604 }
0x20f1   : > { %v2607_v44 = vadd.f32 %v2605_v43, %v2597_v42 }
0x20f3   : > { %3802 = vtanh.f32 %v2607_v44  ;;  %v2702_v62 = vrot.slane %v2607_v44, 7 }
0x20fd   : > { %v3803_v45 = vpop.eup %3802 }
0x20fe   : > { %2610 = vrot.lane.b32.xlu0 %v3803_v45, %s4585_s20 }
0x2170   : > { %v2611_v46 = vpop.permute.xlu0 %2610 }
0x2171   : > { %v2613_v47 = vmul.f32 %v3801_v38, %v2611_v46 }
0x2173   : > { %v2615_v48 = vrot.slane %v2613_v47, 3  ;;  %v3047_v49 = vsel %vm3046_vm7, %v3045_v27, %v2613_v47 }
0x2175   : > { %2616 = vrot.lane.b32.xlu1 %v2615_v48, %s3909_s26 }
0x21e7   : > { %v2617_v50 = vpop.permute.xlu1 %2616 }
0x21e8   : > { %3544 = vmatmul.mubr.msk.f32.vlgmr.msra.gmra.mrb[26].mxu1 %vm574_vm0, %v2617_v50 }
0x21e9   : > { %3683 = vmatpush3.bf16.msra.mxu1 %v4373_v12  ;;  %3565 = vmatprep.mubr.msk.f32.mxu1 %vm3901_vm1, %v3902_v13 }
0x21ea   : > { %3684 = vmatprep.subr.bf16.mxu1 %v3900_v10 }
0x21ed   : > { %3686 = vmatpush3.bf16.msra.mxu1 %v4383_v16 }
0x22bb   : > { %v2686_v51 = vpop.f32.mrb[26].mxu1 }
0x22bc   : > { %v2691_v52 = vrot.slane %v2686_v51, 4  ;;  %v3545_v53 = vpop.f32.mrb[27].mxu1 }
0x22be   : > { %v2693_v54 = vadd.f32 %v2691_v52, %v4410_v29 }
0x22c0   : > { %3804 = vtanh.f32 %v2693_v54  ;;  %v3216_v56 = vmul.f32 -1.442695, %v2693_v54 }
0x22c2   : > { %3806 = vpow2.f32 %v3216_v56 }
0x22ca   : > { %v3805_v55 = vpop.eup %3804 }
0x22cb   : > { %2706 = vrot.lane.b32.xlu0 %v3805_v55, %s4585_s20 }
0x22cc   : > { %v3807_v57 = vpop.eup %3806 }
0x22cd   : > { %v2697_v58 = vadd.f32 1.0, %v3807_v57 }
0x22cf   : > { %3808 = vrcp.f32 %v2697_v58 }
0x22d9   : > { %v3809_v59 = vpop.eup %3808 }
0x22da   : > { %v2704_v63 = vmul.f32 %v3809_v59, %v2702_v62 }
0x233d   : > { %v2707_v60 = vpop.permute.xlu0 %2706 }
0x233e   : > { %v2709_v61 = vmul.f32 %v3809_v59, %v2707_v60 }
0x2340   : > { %2711 = vrot.lane.b32.xlu1 %v2709_v61, %s3909_s26 }
0x23b2   : > { %v2712_v0 = vpop.permute.xlu1 %2711 }
0x23b3   : > { %v2714_v1 = vadd.f32 %v2712_v0, %v2704_v63 }
0x23b5   : > { %3810 = vtanh.f32 %v2714_v1 }
0x23bf   : > { %v3811_v2 = vpop.eup %3810 }
0x23c0   : > { %2717 = vrot.lane.b32.xlu0 %v3811_v2, %s4585_s20 }
0x2432   : > { %v2718_v3 = vpop.permute.xlu0 %2717 }
0x2433   : > { %v2720_v4 = vmul.f32 %v3809_v59, %v2718_v3 }
0x2435   : > { %v2722_v5 = vrot.slane %v2720_v4, 4  ;;  %v3049_v6 = vsel %vm3048_vm8, %v3047_v49, %v2720_v4 }
0x2437   : > { %2723 = vrot.lane.b32.xlu1 %v2722_v5, %s3909_s26 }
0x24a9   : > { %v2724_v7 = vpop.permute.xlu1 %2723 }
0x24aa   : > { %3555 = vmatmul.mubr.msk.f32.vlgmr.msra.gmra.mrb[16].mxu0 %vm574_vm0, %v2724_v7 }
0x24ab   : > { %3689 = vmatpush3.bf16.msra.mxu0 %v4373_v12  ;;  %3576 = vmatprep.mubr.msk.f32.mxu0 %vm3901_vm1, %v3902_v13 }
0x24ac   : > { %3690 = vmatprep.subr.bf16.mxu0 %v3900_v10  ;;  %v2809_v10 = vrot.slane %v2714_v1, 7 }
0x24af   : > { %3692 = vmatpush3.bf16.msra.mxu0 %v4383_v16 }
0x257d   : > { %v2793_v8 = vpop.f32.mrb[16].mxu0 }
0x257e   : > { %v2798_v9 = vrot.slane %v2793_v8, 3  ;;  %v3556_v11 = vpop.f32.mrb[17].mxu0 }
0x2580   : > { %v2800_v14 = vadd.f32 %v2798_v9, %v4410_v29 }
0x2582   : > { %3812 = vtanh.f32 %v2800_v14  ;;  %v3218_v17 = vmul.f32 -1.442695, %v2800_v14 }
0x2584   : > { %3814 = vpow2.f32 %v3218_v17 }
0x258c   : > { %v3813_v15 = vpop.eup %3812 }
0x258d   : > { %2813 = vrot.lane.b32.xlu0 %v3813_v15, %s4585_s20 }
0x258e   : > { %v3815_v18 = vpop.eup %3814 }
0x258f   : > { %v2804_v12 = vadd.f32 1.0, %v3815_v18 }
0x2591   : > { %3816 = vrcp.f32 %v2804_v12 }
0x259b   : > { %v3817_v19 = vpop.eup %3816 }
0x259c   : > { %v2811_v16 = vmul.f32 %v3817_v19, %v2809_v10 }
0x25ff   : > { %v2814_v13 = vpop.permute.xlu0 %2813 }
0x2600   : > { %v2816_v20 = vmul.f32 %v3817_v19, %v2814_v13 }
0x2602   : > { %2818 = vrot.lane.b32.xlu1 %v2816_v20, %s3909_s26 }
0x2674   : > { %v2819_v21 = vpop.permute.xlu1 %2818 }
0x2675   : > { %v2821_v22 = vadd.f32 %v2819_v21, %v2811_v16 }
0x2677   : > { %3818 = vtanh.f32 %v2821_v22  ;;  %v2916_v41 = vrot.slane %v2821_v22, 7 }
0x2681   : > { %v3819_v23 = vpop.eup %3818 }
0x2682   : > { %2824 = vrot.lane.b32.xlu0 %v3819_v23, %s4585_s20 }
0x26f4   : > { %v2825_v24 = vpop.permute.xlu0 %2824 }
0x26f5   : > { %v2827_v25 = vmul.f32 %v3817_v19, %v2825_v24 }
0x26f7   : > { %v2829_v26 = vrot.slane %v2827_v25, 5  ;;  %v3051_v27 = vsel %vm3050_vm9, %v3049_v6, %v2827_v25 }
0x26f9   : > { %2830 = vrot.lane.b32.xlu1 %v2829_v26, %s3909_s26 }
0x276b   : > { %v2831_v28 = vpop.permute.xlu1 %2830 }
0x276c   : > { %3566 = vmatmul.mubr.msk.f32.vlgmr.msra.gmra.mrb[28].mxu1 %vm574_vm0, %v2831_v28 }
0x283f   : > { %v2900_v30 = vpop.f32.mrb[28].mxu1 }
0x2840   : > { %v2905_v31 = vrot.slane %v2900_v30, 2  ;;  %v3567_v32 = vpop.f32.mrb[29].mxu1 }
0x2842   : > { %v2907_v33 = vadd.f32 %v2905_v31, %v4410_v29 }
0x2844   : > { %3820 = vtanh.f32 %v2907_v33  ;;  %v3220_v35 = vmul.f32 -1.442695, %v2907_v33 }
0x2846   : > { %3822 = vpow2.f32 %v3220_v35 }
0x284e   : > { %v3821_v34 = vpop.eup %3820 }
0x284f   : > { %2920 = vrot.lane.b32.xlu0 %v3821_v34, %s4585_s20 }
0x2850   : > { %v3823_v36 = vpop.eup %3822 }
0x2851   : > { %v2911_v37 = vadd.f32 1.0, %v3823_v36 }
0x2853   : > { %3824 = vrcp.f32 %v2911_v37 }
0x285d   : > { %v3825_v38 = vpop.eup %3824 }
0x285e   : > { %v2918_v42 = vmul.f32 %v3825_v38, %v2916_v41 }
0x28c1   : > { %v2921_v39 = vpop.permute.xlu0 %2920 }
0x28c2   : > { %v2923_v40 = vmul.f32 %v3825_v38, %v2921_v39 }
0x28c4   : > { %2925 = vrot.lane.b32.xlu1 %v2923_v40, %s3909_s26 }
0x2936   : > { %v2926_v43 = vpop.permute.xlu1 %2925 }
0x2937   : > { %v2928_v44 = vadd.f32 %v2926_v43, %v2918_v42 }
0x2939   : > { %3826 = vtanh.f32 %v2928_v44  ;;  %v3023_v62 = vrot.slane %v2928_v44, 7 }
0x2943   : > { %v3827_v45 = vpop.eup %3826 }
0x2944   : > { %2931 = vrot.lane.b32.xlu0 %v3827_v45, %s4585_s20 }
0x29b6   : > { %v2932_v46 = vpop.permute.xlu0 %2931 }
0x29b7   : > { %v2934_v47 = vmul.f32 %v3825_v38, %v2932_v46 }
0x29b9   : > { %v2936_v48 = vrot.slane %v2934_v47, 6  ;;  %v3053_v49 = vsel %vm3052_vm10, %v3051_v27, %v2934_v47 }
0x29bb   : > { %2937 = vrot.lane.b32.xlu1 %v2936_v48, %s3909_s26 }
0x2a2d   : > { %v2938_v50 = vpop.permute.xlu1 %2937 }
0x2a2e   : > { %3577 = vmatmul.mubr.msk.f32.vlgmr.msra.gmra.mrb[18].mxu0 %vm574_vm0, %v2938_v50 }
0x2b01   : > { %v3007_v51 = vpop.f32.mrb[18].mxu0 }
0x2b02   : > { %v3012_v52 = vrot.slane %v3007_v51, 1  ;;  %v3578_v53 = vpop.f32.mrb[19].mxu0 }
0x2b04   : > { %v3014_v54 = vadd.f32 %v3012_v52, %v4410_v29 }
0x2b06   : > { %3828 = vtanh.f32 %v3014_v54  ;;  %v3222_v56 = vmul.f32 -1.442695, %v3014_v54 }
0x2b08   : > { %3830 = vpow2.f32 %v3222_v56 }
0x2b10   : > { %v3829_v55 = vpop.eup %3828 }
0x2b11   : > { %3027 = vrot.lane.b32.xlu0 %v3829_v55, %s4585_s20 }
0x2b12   : > { %v3831_v57 = vpop.eup %3830 }
0x2b13   : > { %v3018_v58 = vadd.f32 1.0, %v3831_v57 }
0x2b15   : > { %3832 = vrcp.f32 %v3018_v58 }
0x2b1f   : > { %v3833_v59 = vpop.eup %3832 }
0x2b20   : > { %v3025_v63 = vmul.f32 %v3833_v59, %v3023_v62 }
0x2b83   : > { %v3028_v60 = vpop.permute.xlu0 %3027 }
0x2b84   : > { %v3030_v61 = vmul.f32 %v3833_v59, %v3028_v60 }
0x2b86   : > { %3032 = vrot.lane.b32.xlu1 %v3030_v61, %s3909_s26 }
0x2bf8   : > { %v3033_v0 = vpop.permute.xlu1 %3032 }
0x2bf9   : > { %v3035_v29 = vadd.f32 %v3033_v0, %v3025_v63 }
0x2bfb   : > { %3834 = vtanh.f32 %v3035_v29 }
0x2c05   : > { %v3835_v1 = vpop.eup %3834 }
0x2c06   : > { %3038 = vrot.lane.b32.xlu0 %v3835_v1, %s4585_s20  ;;  %s3062_s20 = scalar_lea.sflag [#allocation3], %s564_s3 }
0x2c78   : > { %v3039_v2 = vpop.permute.xlu0 %3038 }
0x2c79   : > { %v3041_v3 = vmul.f32 %v3833_v59, %v3039_v2 }
0x2c7b   : > { %v3055_v4 = vsel %vm3054_vm11, %v3053_v49, %v3041_v3 }
0x2c7c   : > { %3057 = vrot.lane.b32.xlu1 %v3055_v4, %s3909_s26  ;;  %s3836_s26 = scalar_lea.vmem %s4498_s22, 128 }
0x2c7d   : > { %p3837_p11 = scmp.ne.s32.totalorder %s4498_s22, %s3836_s26  ;;  %p3844_p1 = scmp.lt.s32.totalorder %s3842_s21, %s3836_s26 }
0x2c7f   : > { %p3838_p12 = pnand %p3837_p11, %p4044_p5  ;;  %p3845_p2 = por %p3844_p1, %p3843_p0 }
0x2c81   : > { %p3839_p13 = pneg %p3838_p12 }
0x2c83   : > { %p3846_p3 = pnand %p3845_p2, %p3839_p13 }
0x2cee   : > { %v3058_v5 = vpop.permute.xlu1 %3057 }
0x2cef   : > { %3060 = vst.msk [vmem:[%s566_s29] sm:$0xff] %vm574_vm0, %v3058_v5 }
0x2cf0   : > { %3849 = shalt.err (!%p3846_p3)
}
0x2cf1   : > { %s3850_s3 = scalar_lea.hbm %s4496_s1, 128  ;;  %s3854_s25 = scalar_lea.hbm %s4557_s18, 256 }
0x2cf2   : > { %p3851_p4 = scmp.ne.s32.totalorder %s4496_s1, %s3850_s3  ;;  %p3855_p9 = scmp.lt.u32.totalorder %s4496_s1, %s4557_s18 }
0x2cf3   : > { %p3856_p10 = scmp.lt.u32.totalorder %s3854_s25, %s3850_s3  ;;  %p3858_p12 = scmp.lt.u32.totalorder %s3850_s3, %s4496_s1 }
0x2cf4   : > { %p3852_p7 = pnand %p3851_p4, %p4044_p5 }
0x2cf5   : > { %p3857_p11 = por %p3856_p10, %p3855_p9 }
0x2cf6   : > { %p3853_p8 = pneg %p3852_p7 }
0x2cf7   : > { %p3859_p13 = por %p3858_p12, %p3857_p11 }
0x2cf9   : > { %p3860_p0 = pnand %p3859_p13, %p3853_p8 }
0x2cfb   : > { %3863 = shalt.err (!%p3860_p0)
}
0x2cfc   : > { %3693 = dma.vmem_to_hbm [thread:$0]  (%p4044_p5), %s4498_s22, 128, %s4496_s1, %s3062_s20  }
0x2cfd PF: > { %p3699_p1 = scmp.ge.s32.totalorder %s3898_s30, 2  ;;  %s3087_s26 = sand.u32 1, %s3886_s27  }
0x2cfe   : > { %s3088_s21 = scalar_lea.sflag [#allocation3], %s3087_s26 }
0x2cff   : > { %p3696_p2 = pnand %p3699_p1, %p4048_p6 }
0x2d01   : > { %3881 = dma.done.wait (!%p3696_p2), %s3088_s21, 128  }
0x2d02   : > { %3883 = vsyncadd (!%p3696_p2), %s3088_s21, 4294967168  ;;  %s4587_s30 = sld [smem:[#allocation6_spill]]  ;;  %s4588_s3 = sld [smem:[#allocation5_spill]] }
0x2d03   : > { %s4589_s29 = sld [smem:[#allocation7_spill]]  ;;  %s4590_s27 = smov %s3890_s28 }
0x2d08   : > { %p28_p3 = scmp.ge.s32.totalorder %s4587_s30, 4   ;;  %s4591_s28 = smov %s4588_s3 }
0x2d0a   :  { %30 = sbr.rel (!%p28_p3) target bundleno = 8 (0x8), region = 139 }
0x2d11   :  { %3093 = vsyncpa [#allocation3], 1 }
0x2d12   :  { %3095 = vsyncpa [#allocation3 + $0x1], 1 }

</bundles_post_ra>
